<compile_context>
chip_gen: v6e
topology: v6e:2x2x1
jax: 0.10.0
libtpu: 0.0.40
codegen_flags: <defaults>
</compile_context>

<pallas_src>
import jax
import jax.numpy as jnp
from jax import lax
from jax.experimental import pallas as pl
from jax.experimental.pallas import tpu as pltpu


def _round_up(x, m):
    return (x + m - 1) // m * m


# --------- single fused kernel: conv GEMM (+bias+ReLU) -> AvgPool3d -> MIL head ----------
def _make_fused_kernel(K, POOL, Cp, NC, A, k_min, multiclass):
    inv_pool = 1.0 / float(POOL)

    def kernel(x_ref, wc_ref, bc_ref, wf_ref, bf_ref, wa_ref, ba_ref, out_ref):
        # backbone stem: conv-as-GEMM, channels-last, lane-dense (Cout padded to Cp)
        y = jnp.dot(x_ref[...], wc_ref[...], preferred_element_type=jnp.float32)
        y = jnp.maximum(y + bc_ref[...], 0.0)                        # (K*POOL, Cp)

        # fused AvgPool3d: rows were pre-ordered so each pool window is POOL
        # consecutive rows -> tile-preserving reshape + sublane reduce (no HBM trip)
        feats = jnp.sum(y.reshape(K, POOL, Cp), axis=1) * inv_pool   # (K, Cp)

        # fused MIL projections: one MXU push, two 128-lane segments so every
        # later slice is 128-aligned (no compaction, no roll)
        z = jnp.dot(feats, wf_ref[...], preferred_element_type=jnp.float32) + bf_ref[...]
        z1 = z[:, :Cp]            # lanes [0:NC) logits, [NC:NC+A) tanh pre-act
        z2 = z[:, Cp:]            # lanes [NC:NC+A) sigm pre-act (aligned with tanh lanes)

        # attention weight; wa_ref is zero outside lanes [NC:NC+A) so full-lane
        # tanh/sigmoid garbage lanes contribute nothing
        gated = jnp.tanh(z1) * jax.nn.sigmoid(z2)
        att = jnp.sum(gated * wa_ref[...], axis=-1, keepdims=True) + ba_ref[...]
        w_att = jax.nn.sigmoid(att)                                  # (K, 1)

        # per-class probabilities on lanes [0:NC) via lane mask
        lane = lax.broadcasted_iota(jnp.int32, (K, Cp), 1)
        cmask = lane < NC
        if multiclass:                                               # nn.Softmax(dim=-1)
            zl = jnp.where(cmask, z1, -jnp.inf)
            m = jnp.max(zl, axis=-1, keepdims=True)
            e = jnp.exp(zl - m)                                      # masked lanes -> 0
            x_local = e / jnp.sum(e, axis=-1, keepdims=True)
        else:                                                        # nn.Sigmoid()
            x_local = jnp.where(cmask, jax.nn.sigmoid(z1), 0.0)

        # attention-weighted average over this batch element's K patches
        num = jnp.sum(x_local * w_att, axis=0, keepdims=True)        # (1, Cp)
        den = jnp.maximum(jnp.sum(w_att, axis=0, keepdims=True), k_min)
        out_ref[...] = (num / den).reshape(1, 1, Cp)                 # lane-dense store

    return kernel


def fused_forward_call(col, wc, bc, wf, bf, wa, ba, *, B, K, POOL, Cp, Kp,
                       NC, A, k_min, multiclass):
    MR = K * POOL
    kernel = _make_fused_kernel(K, POOL, Cp, NC, A, float(k_min), multiclass)
    out = pl.pallas_call(
        kernel,
        out_shape=jax.ShapeDtypeStruct((B, 1, Cp), jnp.float32),
        grid_spec=pltpu.PrefetchScalarGridSpec(
            num_scalar_prefetch=0,
            grid=(B,),                                  # one batch element per step
            in_specs=[
                pl.BlockSpec((MR, Kp), lambda b: (b, 0)),       # per-batch im2col rows
                pl.BlockSpec((Kp, Cp), lambda b: (0, 0)),       # conv weight (resident)
                pl.BlockSpec((1, Cp), lambda b: (0, 0)),
                pl.BlockSpec((Cp, 2 * Cp), lambda b: (0, 0)),   # fused MIL weights
                pl.BlockSpec((1, 2 * Cp), lambda b: (0, 0)),
                pl.BlockSpec((1, Cp), lambda b: (0, 0)),
                pl.BlockSpec((1, 1), lambda b: (0, 0)),
            ],
            out_specs=pl.BlockSpec((1, 1, Cp), lambda b: (b, 0, 0)),
        ),
        compiler_params=pltpu.CompilerParams(
            dimension_semantics=("parallel",)),         # both v7x TCs busy
    )(col, wc, bc, wf, bf, wa, ba)
    return out[:, 0, :]


# --------------------------------- wrapper (XLA glue) --------------------------------
def deep_caries_classifier_forward(img, params, cfg):
    Cf = cfg['num_fmap_channels']
    NC = cfg['num_classes']
    A = cfg['att_dim']
    ps, pst = cfg['patch_size'], cfg['patch_stride']
    multiclass = cfg['output_type'] == 'multiclass'

    B, Cin, D, H, W = img.shape
    k, stride, pad = 3, 2, 1
    Do = (D + 2 * pad - k) // stride + 1
    Ho = (H + 2 * pad - k) // stride + 1
    Wo = (W + 2 * pad - k) // stride + 1
    Pd = (Do - ps) // pst + 1
    Ph = (Ho - ps) // pst + 1
    Pw = (Wo - ps) // pst + 1
    K = Pd * Ph * Pw                       # patches per batch element
    POOL = ps ** 3                         # rows per pool window
    MR = K * POOL                          # GEMM rows per batch element

    Cp = _round_up(max(Cf, 128), 128)      # lane-dense channel dim
    Kc = Cin * k ** 3
    Kp = _round_up(max(Kc, 128), 128)      # lane-aligned contraction dim

    assert MR % 8 == 0, "per-batch GEMM row count must be a multiple of 8"
    assert NC + A <= Cp

    # im2col, rows ordered (pool window, intra-window offset) so AvgPool3d fuses
    # into the kernel as a reshape + sublane reduce.  Overlapping / partial pool
    # windows are handled by the gather below (rows may repeat / be dropped).
    xp = jnp.pad(img, ((0, 0), (0, 0), (pad, pad), (pad, pad), (pad, pad)))
    taps = []
    for dz in range(k):
        for dy in range(k):
            for dx in range(k):
                taps.append(xp[:, :,
                               dz:dz + Do * stride:stride,
                               dy:dy + Ho * stride:stride,
                               dx:dx + Wo * stride:stride])
    col = jnp.stack(taps, axis=-1)                          # (B, Cin, Do, Ho, Wo, 27)
    d_sel = (jnp.arange(Pd)[:, None] * pst + jnp.arange(ps)[None, :]).reshape(-1)
    h_sel = (jnp.arange(Ph)[:, None] * pst + jnp.arange(ps)[None, :]).reshape(-1)
    w_sel = (jnp.arange(Pw)[:, None] * pst + jnp.arange(ps)[None, :]).reshape(-1)
    col = jnp.take(col, d_sel, axis=2)
    col = jnp.take(col, h_sel, axis=3)
    col = jnp.take(col, w_sel, axis=4)
    col = col.reshape(B, Cin, Pd, ps, Ph, ps, Pw, ps, k ** 3)
    col = col.transpose(0, 2, 4, 6, 3, 5, 7, 1, 8)          # (B,Pd,Ph,Pw, wz,wy,wx, Cin,27)
    col = col.reshape(B * MR, Kc)
    col = jnp.pad(col, ((0, 0), (0, Kp - Kc)))              # unmasked lane loads

    # conv weight/bias: (Cin*27, Cout) padded to (Kp, Cp); padded channels stay 0
    wc = jnp.pad(params['w_conv'].reshape(Cf, Kc).T, ((0, Kp - Kc), (0, Cp - Cf)))
    bc = jnp.pad(params['b_conv'].reshape(1, Cf), ((0, 0), (0, Cp - Cf)))

    # fused MIL weights: two 128-lane segments, sigm lanes aligned with tanh lanes
    wf = jnp.zeros((Cp, 2 * Cp), jnp.float32)
    wf = wf.at[:Cf, 0:NC].set(params['w_out'])
    wf = wf.at[:Cf, NC:NC + A].set(params['w_t'])
    wf = wf.at[:Cf, Cp + NC:Cp + NC + A].set(params['w_s'])
    bf = jnp.zeros((1, 2 * Cp), jnp.float32)
    bf = bf.at[:, 0:NC].set(params['b_out'])
    bf = bf.at[:, NC:NC + A].set(params['b_t'])
    bf = bf.at[:, Cp + NC:Cp + NC + A].set(params['b_s'])
    wa = jnp.zeros((1, Cp), jnp.float32).at[:, NC:NC + A].set(params['w_a'].T)
    ba = params['b_a']                                      # (1, 1)

    pred = fused_forward_call(col, wc, bc, wf, bf, wa, ba,
                              B=B, K=K, POOL=POOL, Cp=Cp, Kp=Kp,
                              NC=NC, A=A, k_min=cfg['k_min'], multiclass=multiclass)
    return pred[:, :NC]


# ------------------------------- pure-JAX reference ----------------------------------
def avg_pool3d_ncdhw(x, size, stride):
    win = (1, 1, size, size, size)
    strides = (1, 1, stride, stride, stride)
    s = lax.reduce_window(x, 0.0, lax.add, win, strides, 'VALID')
    return s / float(size ** 3)


def reference_forward(img, p, cfg):
    y = lax.conv_general_dilated(
        img, p['w_conv'], (2, 2, 2), [(1, 1), (1, 1), (1, 1)],
        dimension_numbers=('NCDHW', 'OIDHW', 'NCDHW'))
    y = jnp.maximum(y + p['b_conv'][None, :, None, None, None], 0.0)
    y = avg_pool3d_ncdhw(y, cfg['patch_size'], cfg['patch_stride'])
    b, c = y.shape[0], y.shape[1]
    x = y.reshape(b, c, -1).transpose(0, 2, 1).reshape(-1, c)
    logits = x @ p['w_out'] + p['b_out'][0]
    if cfg['output_type'] == 'multiclass':
        x_local = jax.nn.softmax(logits, axis=-1)
    else:
        x_local = jax.nn.sigmoid(logits)
    x_local = x_local.reshape(b, -1, cfg['num_classes'])
    t = jnp.tanh(x @ p['w_t'] + p['b_t'][0])
    s = jax.nn.sigmoid(x @ p['w_s'] + p['b_s'][0])
    w_att = jax.nn.sigmoid((t * s) @ p['w_a'] + p['b_a'][0]).reshape(b, -1, 1)
    return jnp.sum(x_local * w_att, axis=1) / jnp.maximum(
        jnp.sum(w_att, axis=1), cfg['k_min'])


# ------------------------------------- main -------------------------------------------
if __name__ == "__main__":
    cfg = dict(
        output_type='multiclass',
        num_inp_channels=2,
        num_fmap_channels=32,
        att_dim=16,
        num_classes=3,
        patch_size=2,
        patch_stride=2,
        k_min=1.0,
    )

    key = jax.random.PRNGKey(0)
    ks = jax.random.split(key, 10)
    Cin, Cf, A, NC = (cfg['num_inp_channels'], cfg['num_fmap_channels'],
                      cfg['att_dim'], cfg['num_classes'])

    params = {
        # backbone stem (stand-in for 3D ResNet-18)
        'w_conv': 0.1 * jax.random.normal(ks[0], (Cf, Cin, 3, 3, 3), jnp.float32),
        'b_conv': 0.05 * jax.random.normal(ks[1], (Cf,), jnp.float32),
        # output: Linear(C_fmap, num_classes)
        'w_out': 0.1 * jax.random.normal(ks[2], (Cf, NC), jnp.float32),
        'b_out': 0.05 * jax.random.normal(ks[3], (1, NC), jnp.float32),
        # att_tanh: Linear(C_fmap, att_dim)
        'w_t': 0.1 * jax.random.normal(ks[4], (Cf, A), jnp.float32),
        'b_t': 0.05 * jax.random.normal(ks[5], (1, A), jnp.float32),
        # att_sigm: Linear(C_fmap, att_dim)
        'w_s': 0.1 * jax.random.normal(ks[6], (Cf, A), jnp.float32),
        'b_s': 0.05 * jax.random.normal(ks[7], (1, A), jnp.float32),
        # att_outer: Linear(att_dim, 1)
        'w_a': 0.1 * jax.random.normal(ks[8], (A, 1), jnp.float32),
        'b_a': 0.05 * jax.random.normal(ks[9], (1, 1), jnp.float32),
    }

    # img: (B, Cin, D, H, W) — PyTorch NCDHW
    img = jax.random.normal(jax.random.PRNGKey(42), (2, Cin, 16, 16, 16), jnp.float32)

    fwd = jax.jit(lambda im, p: deep_caries_classifier_forward(im, p, cfg))
    pred = jax.block_until_ready(fwd(img, params))

    ref = jax.block_until_ready(reference_forward(img, params, cfg))
    assert pred.shape == (2, NC), pred.shape
    assert jnp.allclose(pred, ref, rtol=1e-4, atol=1e-4), (pred, ref)

    print("KERNEL_OK")
</pallas_src>

<mosaic_0001>
module attributes {stable_mosaic.version = 11 : i64} {
  func.func @kernel(%arg0: i32, %arg1: memref<512x128xf32, #tpu.memory_space<vmem>>, %arg2: memref<128x128xf32, #tpu.memory_space<vmem>>, %arg3: memref<1x128xf32, #tpu.memory_space<vmem>>, %arg4: memref<128x256xf32, #tpu.memory_space<vmem>>, %arg5: memref<1x256xf32, #tpu.memory_space<vmem>>, %arg6: memref<1x128xf32, #tpu.memory_space<vmem>>, %arg7: memref<1x1xf32, #tpu.memory_space<vmem>>, %arg8: memref<1x1x128xf32, #tpu.memory_space<vmem>>) attributes {dimension_semantics = [#tpu.dimension_semantics<parallel>], iteration_bounds = array<i64: 2>, scalar_prefetch = 0 : i64, scratch_operands = 0 : i64, tpu.core_type = #tpu.core_type<tc>, window_params = [{transform_indices = @transform_0, window_bounds = array<i64: 512, 128>}, {pipeline_mode = #tpu.pipeline_mode<synchronous>, transform_indices = @transform_1, window_bounds = array<i64: 128, 128>}, {pipeline_mode = #tpu.pipeline_mode<synchronous>, transform_indices = @transform_2, window_bounds = array<i64: 1, 128>}, {pipeline_mode = #tpu.pipeline_mode<synchronous>, transform_indices = @transform_3, window_bounds = array<i64: 128, 256>}, {pipeline_mode = #tpu.pipeline_mode<synchronous>, transform_indices = @transform_4, window_bounds = array<i64: 1, 256>}, {pipeline_mode = #tpu.pipeline_mode<synchronous>, transform_indices = @transform_5, window_bounds = array<i64: 1, 128>}, {pipeline_mode = #tpu.pipeline_mode<synchronous>, transform_indices = @transform_6, window_bounds = array<i64: 1, 1>}, {transform_indices = @transform_7, window_bounds = array<i64: 1, 1, 128>}]} {
    %c0 = arith.constant 0 : index
    %c0_0 = arith.constant 0 : index
    %0 = vector.load %arg1[%c0, %c0_0] : memref<512x128xf32, #tpu.memory_space<vmem>>, vector<512x128xf32>
    %c0_1 = arith.constant 0 : index
    %c0_2 = arith.constant 0 : index
    %1 = vector.load %arg2[%c0_1, %c0_2] : memref<128x128xf32, #tpu.memory_space<vmem>>, vector<128x128xf32>
    %cst = arith.constant dense<0.000000e+00> : vector<512x128xf32>
    %2 = tpu.matmul %0, %1, %cst {dimension_numbers = #tpu.dot_dimension_numbers<[1], [0], [0], [1], [0, 0, 1, 1], [], []>} : vector<512x128xf32>, vector<128x128xf32>, vector<512x128xf32> -> vector<512x128xf32>
    %c0_3 = arith.constant 0 : index
    %c0_4 = arith.constant 0 : index
    %3 = vector.load %arg3[%c0_3, %c0_4] : memref<1x128xf32, #tpu.memory_space<vmem>>, vector<1x128xf32>
    %4 = vector.broadcast %3 : vector<1x128xf32> to vector<512x128xf32>
    %5 = arith.addf %2, %4 : vector<512x128xf32>
    %cst_5 = arith.constant 0.000000e+00 : f32
    %6 = vector.broadcast %cst_5 : f32 to vector<512x128xf32>
    %7 = arith.maximumf %5, %6 : vector<512x128xf32>
    %8 = vector.shape_cast %7 : vector<512x128xf32> to vector<64x8x128xf32>
    %cst_6 = arith.constant dense<0.000000e+00> : vector<64x128xf32>
    %9 = vector.multi_reduction <add>, %8, %cst_6 [1] : vector<64x8x128xf32> to vector<64x128xf32>
    %cst_7 = arith.constant 1.250000e-01 : f32
    %10 = vector.broadcast %cst_7 : f32 to vector<64x128xf32>
    %11 = arith.mulf %9, %10 : vector<64x128xf32>
    %c0_8 = arith.constant 0 : index
    %c0_9 = arith.constant 0 : index
    %12 = vector.load %arg4[%c0_8, %c0_9] : memref<128x256xf32, #tpu.memory_space<vmem>>, vector<128x256xf32>
    %cst_10 = arith.constant dense<0.000000e+00> : vector<64x256xf32>
    %13 = tpu.matmul %11, %12, %cst_10 {dimension_numbers = #tpu.dot_dimension_numbers<[1], [0], [0], [1], [0, 0, 1, 1], [], []>} : vector<64x128xf32>, vector<128x256xf32>, vector<64x256xf32> -> vector<64x256xf32>
    %c0_11 = arith.constant 0 : index
    %c0_12 = arith.constant 0 : index
    %14 = vector.load %arg5[%c0_11, %c0_12] : memref<1x256xf32, #tpu.memory_space<vmem>>, vector<1x256xf32>
    %15 = vector.broadcast %14 : vector<1x256xf32> to vector<64x256xf32>
    %16 = arith.addf %13, %15 : vector<64x256xf32>
    %17 = vector.extract_strided_slice %16 {offsets = [0, 0], sizes = [64, 128], strides = [1, 1]} : vector<64x256xf32> to vector<64x128xf32>
    %18 = vector.extract_strided_slice %16 {offsets = [0, 128], sizes = [64, 128], strides = [1, 1]} : vector<64x256xf32> to vector<64x128xf32>
    %19 = math.tanh %17 : vector<64x128xf32>
    %20 = arith.negf %18 : vector<64x128xf32>
    %21 = math.exp %20 : vector<64x128xf32>
    %cst_13 = arith.constant 1.000000e+00 : f32
    %22 = vector.broadcast %cst_13 : f32 to vector<64x128xf32>
    %23 = arith.addf %22, %21 : vector<64x128xf32>
    %24 = arith.divf %22, %23 : vector<64x128xf32>
    %25 = arith.mulf %19, %24 : vector<64x128xf32>
    %c0_14 = arith.constant 0 : index
    %c0_15 = arith.constant 0 : index
    %26 = vector.load %arg6[%c0_14, %c0_15] : memref<1x128xf32, #tpu.memory_space<vmem>>, vector<1x128xf32>
    %27 = vector.broadcast %26 : vector<1x128xf32> to vector<64x128xf32>
    %28 = arith.mulf %25, %27 : vector<64x128xf32>
    %cst_16 = arith.constant dense<0.000000e+00> : vector<64xf32>
    %29 = vector.multi_reduction <add>, %28, %cst_16 [1] : vector<64x128xf32> to vector<64xf32>
    %30 = vector.shape_cast %29 : vector<64xf32> to vector<64x1xf32>
    %c0_17 = arith.constant 0 : index
    %c0_18 = arith.constant 0 : index
    %31 = vector.load %arg7[%c0_17, %c0_18] : memref<1x1xf32, #tpu.memory_space<vmem>>, vector<1x1xf32>
    %32 = vector.broadcast %31 : vector<1x1xf32> to vector<64x1xf32>
    %33 = arith.addf %30, %32 : vector<64x1xf32>
    %34 = arith.negf %33 : vector<64x1xf32>
    %35 = math.exp %34 : vector<64x1xf32>
    %cst_19 = arith.constant 1.000000e+00 : f32
    %36 = vector.broadcast %cst_19 : f32 to vector<64x1xf32>
    %37 = arith.addf %36, %35 : vector<64x1xf32>
    %38 = arith.divf %36, %37 : vector<64x1xf32>
    %39 = tpu.iota {dimensions = array<i32: 1>} : vector<64x128xi32>
    %c3_i32 = arith.constant 3 : i32
    %40 = vector.broadcast %c3_i32 : i32 to vector<64x128xi32>
    %41 = arith.cmpi slt, %39, %40 : vector<64x128xi32>
    %cst_20 = arith.constant 0xFF800000 : f32
    %42 = vector.broadcast %cst_20 : f32 to vector<64x128xf32>
    %43 = arith.select %41, %17, %42 : vector<64x128xi1>, vector<64x128xf32>
    %cst_21 = arith.constant dense<0xFF800000> : vector<64xf32>
    %44 = vector.multi_reduction <maximumf>, %43, %cst_21 [1] : vector<64x128xf32> to vector<64xf32>
    %45 = vector.shape_cast %44 : vector<64xf32> to vector<64x1xf32>
    %46 = vector.broadcast %45 : vector<64x1xf32> to vector<64x128xf32>
    %47 = arith.subf %43, %46 : vector<64x128xf32>
    %48 = math.exp %47 : vector<64x128xf32>
    %cst_22 = arith.constant dense<0.000000e+00> : vector<64xf32>
    %49 = vector.multi_reduction <add>, %48, %cst_22 [1] : vector<64x128xf32> to vector<64xf32>
    %50 = vector.shape_cast %49 : vector<64xf32> to vector<64x1xf32>
    %51 = vector.broadcast %50 : vector<64x1xf32> to vector<64x128xf32>
    %52 = arith.divf %48, %51 : vector<64x128xf32>
    %53 = vector.broadcast %38 : vector<64x1xf32> to vector<64x128xf32>
    %54 = arith.mulf %52, %53 : vector<64x128xf32>
    %cst_23 = arith.constant dense<0.000000e+00> : vector<128xf32>
    %55 = vector.multi_reduction <add>, %54, %cst_23 [0] : vector<64x128xf32> to vector<128xf32>
    %56 = vector.shape_cast %55 : vector<128xf32> to vector<1x128xf32>
    %cst_24 = arith.constant dense<0.000000e+00> : vector<1xf32>
    %57 = vector.multi_reduction <add>, %38, %cst_24 [0] : vector<64x1xf32> to vector<1xf32>
    %58 = vector.shape_cast %57 : vector<1xf32> to vector<1x1xf32>
    %cst_25 = arith.constant 1.000000e+00 : f32
    %59 = vector.broadcast %cst_25 : f32 to vector<1x1xf32>
    %60 = arith.maximumf %58, %59 : vector<1x1xf32>
    %61 = vector.broadcast %60 : vector<1x1xf32> to vector<1x128xf32>
    %62 = arith.divf %56, %61 : vector<1x128xf32>
    %63 = vector.shape_cast %62 : vector<1x128xf32> to vector<1x1x128xf32>
    %c0_26 = arith.constant 0 : index
    %c0_27 = arith.constant 0 : index
    %c0_28 = arith.constant 0 : index
    %64 = vector.load %arg8[%c0_26, %c0_27, %c0_28] : memref<1x1x128xf32, #tpu.memory_space<vmem>>, vector<1x1x128xf32>
    tpu.vector_store %arg8[%c0_26, %c0_27, %c0_28], %63 {strides = array<i32>} : memref<1x1x128xf32, #tpu.memory_space<vmem>>, vector<1x1x128xf32>,
    return
  }
  func.func @transform_0(%arg0: i32) -> (i32, i32) {
    %c0_i32 = arith.constant 0 : i32
    %c0_i32_0 = arith.constant 0 : i32
    return %arg0, %c0_i32 : i32, i32
  }
  func.func @transform_1(%arg0: i32) -> (i32, i32) {
    %c0_i32 = arith.constant 0 : i32
    %c0_i32_0 = arith.constant 0 : i32
    %c0_i32_1 = arith.constant 0 : i32
    return %c0_i32, %c0_i32_0 : i32, i32
  }
  func.func @transform_2(%arg0: i32) -> (i32, i32) {
    %c0_i32 = arith.constant 0 : i32
    %c0_i32_0 = arith.constant 0 : i32
    %c0_i32_1 = arith.constant 0 : i32
    return %c0_i32, %c0_i32_0 : i32, i32
  }
  func.func @transform_3(%arg0: i32) -> (i32, i32) {
    %c0_i32 = arith.constant 0 : i32
    %c0_i32_0 = arith.constant 0 : i32
    %c0_i32_1 = arith.constant 0 : i32
    return %c0_i32, %c0_i32_0 : i32, i32
  }
  func.func @transform_4(%arg0: i32) -> (i32, i32) {
    %c0_i32 = arith.constant 0 : i32
    %c0_i32_0 = arith.constant 0 : i32
    %c0_i32_1 = arith.constant 0 : i32
    return %c0_i32, %c0_i32_0 : i32, i32
  }
  func.func @transform_5(%arg0: i32) -> (i32, i32) {
    %c0_i32 = arith.constant 0 : i32
    %c0_i32_0 = arith.constant 0 : i32
    %c0_i32_1 = arith.constant 0 : i32
    return %c0_i32, %c0_i32_0 : i32, i32
  }
  func.func @transform_6(%arg0: i32) -> (i32, i32) {
    %c0_i32 = arith.constant 0 : i32
    %c0_i32_0 = arith.constant 0 : i32
    %c0_i32_1 = arith.constant 0 : i32
    return %c0_i32, %c0_i32_0 : i32, i32
  }
  func.func @transform_7(%arg0: i32) -> (i32, i32, i32) {
    %c0_i32 = arith.constant 0 : i32
    %c0_i32_0 = arith.constant 0 : i32
    %c0_i32_1 = arith.constant 0 : i32
    return %arg0, %c0_i32, %c0_i32_0 : i32, i32, i32
  }
}

</mosaic_0001>

<bundles_post_ra>
// kernel: _lambda_.1
= control target key start
LH: loop header
LB: loop body
LE: loop exit
PB: predicated region body
PF: predicated region fallthrough
CT: control target
= control target key end

     0   :  { %s3181_s0 = inlined_call_operand.vmem [shape: f32[1024,128], index: 0, kind: input, shape index: {}]   ;;  %s3182_s1 = inlined_call_operand.vmem [shape: f32[128,128], index: 1, kind: input, shape index: {}]   ;;  %s3183_s2 = inlined_call_operand.vmem [shape: f32[1,128], index: 2, kind: input, shape index: {}]   ;;  %s3184_s3 = inlined_call_operand.vmem [shape: f32[128,256], index: 3, kind: input, shape index: {}]   ;;  %s3185_s4 = inlined_call_operand.vmem [shape: f32[1,256], index: 4, kind: input, shape index: {}]   ;;  %s3186_s5 = inlined_call_operand.vmem [shape: f32[1,128], index: 5, kind: input, shape index: {}]   ;;  %s3187_s6 = inlined_call_operand.<no memory space> [shape: f32[1,1], index: 6, kind: input, shape index: {}]   ;;  %s3188_s7 = inlined_call_operand.hbm [shape: f32[2,1,128], index: 7, kind: output, shape index: {}]  }
   0x1   :  { %v12_v0 = vstv %s3187_s6 }
   0x2   :  { %13 = vst [vmem:[#allocation2] sm:$0x1] %v12_v0 }
   0x3   :  { %14 = vsyncpa [#allocation4], 0 }
   0x4   :  { %16 = vsyncpa [#allocation4 + $0x1], 0  ;;  %s2491_s26 = smov 0   ;;  %s2493_s27 = smov 0  }
   0x5   :  { %s2495_s28 = smov 0   ;;  %s2497_s29 = smov 0  }
   0x6 LB: > { %s2512_s6 = sadd.s32 4294967295, %s2443_s29   ;;  %s1957_s30 = sadd.s32 4294967294, %s2443_s29   ;;  %s2443_s29 = sphi %s2497_s29, %s3194_s29   ;;  %s2439_s28 = sphi %s2495_s28, %s3193_s28   ;;  %s2435_s27 = sphi %s2493_s27, %s3192_s27   ;;  %s2431_s26 = sphi %s2491_s26, %s3191_s26  }
   0x7   : > { %s2516_s8 = sadd.s32 1, %s2443_s29   ;;  %s181_s9 = sadd.s32 1, %s2439_s28 }
   0x8   : > { %s178_s10 = ssub.s32 %s2443_s29, %s2516_s8  ;;  %p191_p0 = scmp.ne.s32.totalorder %s2439_s28, %s2435_s27 }
   0x9   : > { %p179_p1 = scmp.eq.s32.totalorder %s178_s10, 0  ;;  %p192_p2 = scmp.eq.s32.totalorder %s2512_s6, 1 }
   0xa   : > { %p197_p3 = scmp.ne.s32.totalorder %s2435_s27, %s2431_s26  ;;  %p198_p4 = scmp.eq.s32.totalorder %s1957_s30, 1 }
   0xb   : > { %s2527_s11 = scalar_select %p179_p1, %s2439_s28, %s181_s9  }
   0xc   : > { %p2529_p5 = por %p192_p2, %p191_p0  ;;  %p2533_p6 = por %p198_p4, %p197_p3 }
   0xd   : > { %p1960_p7 = scmp.ge.s32.totalorder %s2443_s29, 1  ;;  %p243_p8 = scmp.lt.s32.totalorder %s2443_s29, 3 }
   0xf   : > { %p244_p9 = pnand %p1960_p7, %p243_p8 }
  0x10   : > { %s1961_s18 = sshll.u32 (!%p244_p9), %s2512_s6, 6  ;;  %s272_s20 = sand.u32 (!%p244_p9), 1, %s2435_s27  }
  0x11   : > { %247 = sbr.rel (%p244_p9) target bundleno = 1047 (0x417), region = 48  ;;  %p275_p10 = scmp.lt.s32.totalorder (!%p244_p9), %s1961_s18, 127 }
  0x12   : > { %s1982_s21 = sshll.u32 (!%p244_p9), %s2512_s6, 4  ;;  %s273_s22 = scalar_lea.vmem (!%p244_p9), [#allocation3], %s272_s20 }
  0x13   : > { %s1900_s30 = scalar_lea.hbm (!%p244_p9), %s3188_s7, %s1982_s21  ;;  %s1890_s9 = scalar_lea.sflag (!%p244_p9), [#allocation4], %s272_s20 }
  0x14   : > { %s2447_s14 = smov (!%p244_p9), [#allocation3]  }
  0x15   : > { %s2387_s15 = sshll.u32 (!%p244_p9), %s2447_s14, 4  ;;  %s2388_s15 = int_to_ptr.vmem [resolvable:$false] %s2387_s15 }
  0x16   : > { %v359_v1 = vld [vmem:[%s3182_s1 + $0x78] sm:$0xff]  ;;  %v358_v2 = vld [vmem:[%s3182_s1 + $0x70] sm:$0xff]  ;;  %v357_v3 = vld [vmem:[%s3182_s1 + $0x68] sm:$0xff]  ;;  %s3196_s18 = smov (!%p275_p10, %s1961_s18), 127  ;;  %vm1372_vm0 = vcmask 1041409   ;;  %vm1374_vm1 = vcmask 1042434  }
  0x17   : > { %2065 = vmatprep.subr.mxu0 %v359_v1  ;;  %2193 = vmatprep.subr.mxu1 %v359_v1  ;;  %v356_v4 = vld [vmem:[%s3182_s1 + $0x60] sm:$0xff]  ;;  %s1962_s23 = sshll.u32 %s3196_s18, 3  ;;  %v355_v5 = vld [vmem:[%s3182_s1 + $0x58] sm:$0xff]  ;;  %v354_v7 = vld [vmem:[%s3182_s1 + $0x50] sm:$0xff]  ;;  %vm1376_vm2 = vcmask 1043459   ;;  %vm1378_vm3 = vcmask 1044484  }
  0x18   : > { %2066 = vmatpush3.msra.mxu0 %v359_v1  ;;  %2209 = vmatpush3.msra.mxu1 %v359_v1  ;;  %s2558_s10 = scalar_lea.vmem %s3181_s0, %s1962_s23  ;;  %v353_v8 = vld [vmem:[%s3182_s1 + $0x48] sm:$0xff]  ;;  %v352_v9 = vld [vmem:[%s3182_s1 + $0x40] sm:$0xff]  ;;  %v351_v10 = vld [vmem:[%s3182_s1 + $0x38] sm:$0xff]  ;;  %vm1380_vm4 = vcmask 1045509   ;;  %vm1382_vm5 = vcmask 1046534   ;;  %vm1384_vm6 = vcmask 1047559  }
  0x19   : > { %2067 = vmatprep.subr.mxu0 %v358_v2  ;;  %2194 = vmatprep.subr.mxu1 %v358_v2  ;;  %v280_v6 = vld [vmem:[%s2558_s10] sm:$0xff]  ;;  %v350_v11 = vld [vmem:[%s3182_s1 + $0x30] sm:$0xff]  ;;  %v349_v12 = vld [vmem:[%s3182_s1 + $0x28] sm:$0xff]  ;;  %vm1858_vm8 = vcmask 7168   ;;  %s1902_s23 = sshll.u32 %s273_s22, 4  ;;  %s2389_s6 = scalar_lea.vmem %s2388_s15, 32  ;;  %s1903_s23 = int_to_ptr.vmem [resolvable:$true] %s1902_s23 }
  0x1a   : > { %2068 = vmatpush3.msra.mxu0 %v358_v2  ;;  %2210 = vmatpush3.msra.mxu1 %v358_v2  ;;  %v348_v13 = vld [vmem:[%s3182_s1 + $0x20] sm:$0xff]  ;;  %v347_v14 = vld [vmem:[%s3182_s1 + $0x18] sm:$0xff]  ;;  %v346_v15 = vld [vmem:[%s3182_s1 + $0x10] sm:$0xff]  ;;  %p2390_p0 = scmp.lt.s32.totalorder %s1903_s23, %s2388_s15 }
  0x1b   : > { %2069 = vmatprep.subr.mxu0 %v357_v3  ;;  %2195 = vmatprep.subr.mxu1 %v357_v3  ;;  %v345_v16 = vld [vmem:[%s3182_s1 + $0x8] sm:$0xff]  ;;  %v344_v17 = vld [vmem:[%s3182_s1] sm:$0xff]  ;;  %v282_v19 = vld [vmem:[%s2558_s10 + $0x10] sm:$0xff] }
  0x1c   : > { %2070 = vmatpush3.msra.mxu0 %v357_v3  ;;  %2211 = vmatpush3.msra.mxu1 %v357_v3  ;;  %v281_v18 = vld [vmem:[%s2558_s10 + $0x8] sm:$0xff]  ;;  %v320_v20 = vld [vmem:[%s2558_s10 + $0x140] sm:$0xff]  ;;  %v322_v22 = vld [vmem:[%s2558_s10 + $0x150] sm:$0xff] }
  0x1d   : > { %2071 = vmatprep.subr.mxu0 %v356_v4  ;;  %2196 = vmatprep.subr.mxu1 %v356_v4  ;;  %v321_v21 = vld [vmem:[%s2558_s10 + $0x148] sm:$0xff]  ;;  %v283_v23 = vld [vmem:[%s2558_s10 + $0x18] sm:$0xff]  ;;  %v284_v24 = vld [vmem:[%s2558_s10 + $0x20] sm:$0xff] }
  0x1e   : > { %2072 = vmatpush3.msra.mxu0 %v356_v4  ;;  %2097 = vmatprep.mubr.f32.mxu0 %v280_v6  ;;  %v323_v25 = vld [vmem:[%s2558_s10 + $0x158] sm:$0xff]  ;;  %v324_v26 = vld [vmem:[%s2558_s10 + $0x160] sm:$0xff]  ;;  %v285_v27 = vld [vmem:[%s2558_s10 + $0x28] sm:$0xff] }
  0x1f   : > { %2073 = vmatprep.subr.mxu0 %v355_v5  ;;  %2212 = vmatpush3.msra.mxu1 %v356_v4  ;;  %v286_v28 = vld [vmem:[%s2558_s10 + $0x30] sm:$0xff]  ;;  %v325_v29 = vld [vmem:[%s2558_s10 + $0x168] sm:$0xff]  ;;  %v287_v31 = vld [vmem:[%s2558_s10 + $0x38] sm:$0xff] }
  0x20   : > { %2074 = vmatpush3.msra.mxu0 %v355_v5  ;;  %2197 = vmatprep.subr.mxu1 %v355_v5  ;;  %v326_v30 = vld [vmem:[%s2558_s10 + $0x170] sm:$0xff]  ;;  %v288_v32 = vld [vmem:[%s2558_s10 + $0x40] sm:$0xff]  ;;  %v327_v33 = vld [vmem:[%s2558_s10 + $0x178] sm:$0xff] }
  0x21   : > { %2075 = vmatprep.subr.mxu0 %v354_v7  ;;  %2213 = vmatpush3.msra.mxu1 %v355_v5  ;;  %v328_v34 = vld [vmem:[%s2558_s10 + $0x180] sm:$0xff]  ;;  %v289_v35 = vld [vmem:[%s2558_s10 + $0x48] sm:$0xff]  ;;  %v290_v36 = vld [vmem:[%s2558_s10 + $0x50] sm:$0xff] }
  0x22   : > { %2076 = vmatpush3.msra.mxu0 %v354_v7  ;;  %2198 = vmatprep.subr.mxu1 %v354_v7  ;;  %v329_v37 = vld [vmem:[%s2558_s10 + $0x188] sm:$0xff]  ;;  %v330_v38 = vld [vmem:[%s2558_s10 + $0x190] sm:$0xff]  ;;  %v291_v39 = vld [vmem:[%s2558_s10 + $0x58] sm:$0xff] }
  0x23   : > { %2077 = vmatprep.subr.mxu0 %v353_v8  ;;  %2214 = vmatpush3.msra.mxu1 %v354_v7  ;;  %v292_v40 = vld [vmem:[%s2558_s10 + $0x60] sm:$0xff]  ;;  %v331_v41 = vld [vmem:[%s2558_s10 + $0x198] sm:$0xff]  ;;  %v293_v43 = vld [vmem:[%s2558_s10 + $0x68] sm:$0xff] }
  0x24   : > { %2078 = vmatpush3.msra.mxu0 %v353_v8  ;;  %2199 = vmatprep.subr.mxu1 %v353_v8  ;;  %v332_v42 = vld [vmem:[%s2558_s10 + $0x1a0] sm:$0xff]  ;;  %v294_v44 = vld [vmem:[%s2558_s10 + $0x70] sm:$0xff]  ;;  %v333_v45 = vld [vmem:[%s2558_s10 + $0x1a8] sm:$0xff] }
  0x25   : > { %2079 = vmatprep.subr.mxu0 %v352_v9  ;;  %2215 = vmatpush3.msra.mxu1 %v353_v8  ;;  %v334_v46 = vld [vmem:[%s2558_s10 + $0x1b0] sm:$0xff]  ;;  %v295_v47 = vld [vmem:[%s2558_s10 + $0x78] sm:$0xff]  ;;  %v296_v48 = vld [vmem:[%s2558_s10 + $0x80] sm:$0xff] }
  0x26   : > { %2080 = vmatpush3.msra.mxu0 %v352_v9  ;;  %2200 = vmatprep.subr.mxu1 %v352_v9  ;;  %v335_v49 = vld [vmem:[%s2558_s10 + $0x1b8] sm:$0xff]  ;;  %v336_v50 = vld [vmem:[%s2558_s10 + $0x1c0] sm:$0xff]  ;;  %v297_v51 = vld [vmem:[%s2558_s10 + $0x88] sm:$0xff] }
  0x27   : > { %2081 = vmatprep.subr.mxu0 %v351_v10  ;;  %2216 = vmatpush3.msra.mxu1 %v352_v9  ;;  %v298_v52 = vld [vmem:[%s2558_s10 + $0x90] sm:$0xff]  ;;  %v337_v53 = vld [vmem:[%s2558_s10 + $0x1c8] sm:$0xff]  ;;  %v299_v55 = vld [vmem:[%s2558_s10 + $0x98] sm:$0xff] }
  0x28   : > { %2082 = vmatpush3.msra.mxu0 %v351_v10  ;;  %2201 = vmatprep.subr.mxu1 %v351_v10  ;;  %v338_v54 = vld [vmem:[%s2558_s10 + $0x1d0] sm:$0xff]  ;;  %v300_v56 = vld [vmem:[%s2558_s10 + $0xa0] sm:$0xff]  ;;  %v339_v57 = vld [vmem:[%s2558_s10 + $0x1d8] sm:$0xff] }
  0x29   : > { %2083 = vmatprep.subr.mxu0 %v350_v11  ;;  %2217 = vmatpush3.msra.mxu1 %v351_v10  ;;  %v340_v58 = vld [vmem:[%s2558_s10 + $0x1e0] sm:$0xff]  ;;  %v301_v59 = vld [vmem:[%s2558_s10 + $0xa8] sm:$0xff]  ;;  %v302_v60 = vld [vmem:[%s2558_s10 + $0xb0] sm:$0xff] }
  0x2a   : > { %2084 = vmatpush3.msra.mxu0 %v350_v11  ;;  %2202 = vmatprep.subr.mxu1 %v350_v11  ;;  %v341_v61 = vld [vmem:[%s2558_s10 + $0x1e8] sm:$0xff]  ;;  %v342_v62 = vld [vmem:[%s2558_s10 + $0x1f0] sm:$0xff]  ;;  %v303_v63 = vld [vmem:[%s2558_s10 + $0xb8] sm:$0xff] }
  0x2b   : > { %2085 = vmatprep.subr.mxu0 %v349_v12  ;;  %2218 = vmatpush3.msra.mxu1 %v350_v11  ;;  %v304_v0 = vld [vmem:[%s2558_s10 + $0xc0] sm:$0xff]  ;;  %v343_v1 = vld [vmem:[%s2558_s10 + $0x1f8] sm:$0xff]  ;;  %v305_v2 = vld [vmem:[%s2558_s10 + $0xc8] sm:$0xff] }
  0x2c   : > { %2086 = vmatpush3.msra.mxu0 %v349_v12  ;;  %2203 = vmatprep.subr.mxu1 %v349_v12  ;;  %v306_v3 = vld [vmem:[%s2558_s10 + $0xd0] sm:$0xff]  ;;  %v307_v4 = vld [vmem:[%s2558_s10 + $0xd8] sm:$0xff]  ;;  %v308_v5 = vld [vmem:[%s2558_s10 + $0xe0] sm:$0xff] }
  0x2d   : > { %2087 = vmatprep.subr.mxu0 %v348_v13  ;;  %2219 = vmatpush3.msra.mxu1 %v349_v12  ;;  %v309_v6 = vld [vmem:[%s2558_s10 + $0xe8] sm:$0xff]  ;;  %v310_v7 = vld [vmem:[%s2558_s10 + $0xf0] sm:$0xff]  ;;  %v311_v8 = vld [vmem:[%s2558_s10 + $0xf8] sm:$0xff] }
  0x2e   : > { %2088 = vmatpush3.msra.mxu0 %v348_v13  ;;  %2204 = vmatprep.subr.mxu1 %v348_v13  ;;  %v312_v9 = vld [vmem:[%s2558_s10 + $0x100] sm:$0xff]  ;;  %v313_v10 = vld [vmem:[%s2558_s10 + $0x108] sm:$0xff]  ;;  %v314_v11 = vld [vmem:[%s2558_s10 + $0x110] sm:$0xff] }
  0x2f   : > { %2089 = vmatprep.subr.mxu0 %v347_v14  ;;  %2220 = vmatpush3.msra.mxu1 %v348_v13  ;;  %v315_v12 = vld [vmem:[%s2558_s10 + $0x118] sm:$0xff]  ;;  %v316_v13 = vld [vmem:[%s2558_s10 + $0x120] sm:$0xff] }
  0x30   : > { %2090 = vmatpush3.msra.mxu0 %v347_v14  ;;  %2205 = vmatprep.subr.mxu1 %v347_v14 }
  0x31   : > { %2091 = vmatprep.subr.mxu0 %v346_v15  ;;  %2221 = vmatpush3.msra.mxu1 %v347_v14  ;;  %v1295_v14 = vld [vmem:[%s3184_s3 + $0xf8] sm:$0xff] }
  0x32   : > { %2092 = vmatpush3.msra.mxu0 %v346_v15  ;;  %2206 = vmatprep.subr.mxu1 %v346_v15 }
  0x33   : > { %2093 = vmatprep.subr.mxu0 %v345_v16  ;;  %2222 = vmatpush3.msra.mxu1 %v346_v15  ;;  %v1294_v15 = vld [vmem:[%s3184_s3 + $0xf0] sm:$0xff] }
  0x34   : > { %2094 = vmatpush3.msra.mxu0 %v345_v16  ;;  %2207 = vmatprep.subr.mxu1 %v345_v16 }
  0x35   : > { %2095 = vmatprep.subr.mxu0 %v344_v17  ;;  %2223 = vmatpush3.msra.mxu1 %v345_v16  ;;  %v1293_v16 = vld [vmem:[%s3184_s3 + $0xe8] sm:$0xff] }
  0x36   : > { %2096 = vmatpush3.msra.mxu0 %v344_v17  ;;  %2208 = vmatprep.subr.mxu1 %v344_v17 }
  0x37   : > { %2098 = vmatmul.mubr.f32.vlgmr.msra.gmra.mxu0 %v281_v18  ;;  %2224 = vmatpush3.msra.mxu1 %v344_v17  ;;  %v317_v17 = vld [vmem:[%s2558_s10 + $0x128] sm:$0xff]  ;;  %v1292_v18 = vld [vmem:[%s3184_s3 + $0xe0] sm:$0xff] }
  0x38   : > { %2100 = vmatprep.mubr.f32.mxu0 %v282_v19  ;;  %2157 = vmatprep.mubr.f32.mxu1 %v320_v20  ;;  %v318_v19 = vld [vmem:[%s2558_s10 + $0x130] sm:$0xff]  ;;  %v1291_v20 = vld [vmem:[%s3184_s3 + $0xd8] sm:$0xff] }
  0x39   : > { %2158 = vmatmul.mubr.f32.vlgmr.msra.gmra.mxu1 %v321_v21  ;;  %1443 = vmatprep.subr.mxu1 %v1295_v14  ;;  %v1290_v21 = vld [vmem:[%s3184_s3 + $0xd0] sm:$0xff] }
  0x3a   : > { %2160 = vmatprep.mubr.f32.mxu1 %v322_v22  ;;  %1444 = vmatpush1.msra.mxu1 %v1294_v15  ;;  %v319_v22 = vld [vmem:[%s2558_s10 + $0x138] sm:$0xff]  ;;  %s2383_s10 = scalar_lea.vmem %s1903_s23, 16 }
  0x3b   : > { %2101 = vmatmul.mubr.f32.gmra.mxu0 %v283_v23  ;;  %1445 = vmatprep.subr.mxu1 %v1293_v16  ;;  %v1289_v23 = vld [vmem:[%s3184_s3 + $0xc8] sm:$0xff]  ;;  %p2384_p11 = scmp.ne.s32.totalorder %s1903_s23, %s2383_s10  ;;  %p2391_p1 = scmp.lt.s32.totalorder %s2389_s6, %s2383_s10 }
  0x3c   : > { %2103 = vmatprep.mubr.f32.mxu0 %v284_v24  ;;  %1446 = vmatpush1.msra.mxu1 %v1292_v18  ;;  %v1288_v24 = vld [vmem:[%s3184_s3 + $0xc0] sm:$0xff] }
  0x3d   : > { %2161 = vmatmul.mubr.f32.gmra.mxu1 %v323_v25  ;;  %1447 = vmatprep.subr.mxu1 %v1291_v20  ;;  %v1287_v25 = vld [vmem:[%s3184_s3 + $0xb8] sm:$0xff]  ;;  %p2385_p12 = pnand %p2384_p11, %p2529_p5  ;;  %p2392_p2 = por %p2391_p1, %p2390_p0 }
  0x3e   : > { %2163 = vmatprep.mubr.f32.mxu1 %v324_v26  ;;  %1448 = vmatpush1.msra.mxu1 %v1290_v21  ;;  %v1286_v26 = vld [vmem:[%s3184_s3 + $0xb0] sm:$0xff] }
  0x3f   : > { %2104 = vmatmul.mubr.f32.gmra.mxu0 %v285_v27  ;;  %1449 = vmatprep.subr.mxu1 %v1289_v23  ;;  %v1285_v27 = vld [vmem:[%s3184_s3 + $0xa8] sm:$0xff]  ;;  %p2386_p13 = pneg %p2385_p12 }
  0x40   : > { %2106 = vmatprep.mubr.f32.mxu0 %v286_v28  ;;  %1450 = vmatpush1.msra.mxu1 %v1288_v24  ;;  %v1284_v28 = vld [vmem:[%s3184_s3 + $0xa0] sm:$0xff] }
  0x41   : > { %2164 = vmatmul.mubr.f32.gmra.mxu1 %v325_v29  ;;  %1451 = vmatprep.subr.mxu1 %v1287_v25  ;;  %v1283_v29 = vld [vmem:[%s3184_s3 + $0x98] sm:$0xff]  ;;  %p2393_p3 = pnand %p2392_p2, %p2386_p13 }
  0x42   : > { %2166 = vmatprep.mubr.f32.mxu1 %v326_v30  ;;  %1452 = vmatpush1.msra.mxu1 %v1286_v26  ;;  %v1282_v30 = vld [vmem:[%s3184_s3 + $0x90] sm:$0xff] }
  0x43   : > { %2107 = vmatmul.mubr.f32.gmra.mxu0 %v287_v31  ;;  %1453 = vmatprep.subr.mxu1 %v1285_v27  ;;  %v1281_v31 = vld [vmem:[%s3184_s3 + $0x88] sm:$0xff] }
  0x44   : > { %2109 = vmatprep.mubr.f32.mxu0 %v288_v32  ;;  %1454 = vmatpush1.msra.mxu1 %v1284_v28  ;;  %v1280_v32 = vld [vmem:[%s3184_s3 + $0x80] sm:$0xff] }
  0x45   : > { %2167 = vmatmul.mubr.f32.gmra.mxu1 %v327_v33  ;;  %1455 = vmatprep.subr.mxu1 %v1283_v29  ;;  %v1279_v33 = vld [vmem:[%s3184_s3 + $0x78] sm:$0xff] }
  0x46   : > { %2169 = vmatprep.mubr.f32.mxu1 %v328_v34  ;;  %1456 = vmatpush1.msra.mxu1 %v1282_v30  ;;  %v1278_v34 = vld [vmem:[%s3184_s3 + $0x70] sm:$0xff] }
  0x47   : > { %2110 = vmatmul.mubr.f32.gmra.mxu0 %v289_v35  ;;  %1457 = vmatprep.subr.mxu1 %v1281_v31  ;;  %v1277_v35 = vld [vmem:[%s3184_s3 + $0x68] sm:$0xff] }
  0x48   : > { %2112 = vmatprep.mubr.f32.mxu0 %v290_v36  ;;  %1458 = vmatpush1.msra.mxu1 %v1280_v32  ;;  %v1276_v36 = vld [vmem:[%s3184_s3 + $0x60] sm:$0xff] }
  0x49   : > { %2170 = vmatmul.mubr.f32.gmra.mxu1 %v329_v37  ;;  %1459 = vmatprep.subr.mxu1 %v1279_v33  ;;  %v1275_v37 = vld [vmem:[%s3184_s3 + $0x58] sm:$0xff] }
  0x4a   : > { %2172 = vmatprep.mubr.f32.mxu1 %v330_v38  ;;  %1460 = vmatpush1.msra.mxu1 %v1278_v34  ;;  %v1274_v38 = vld [vmem:[%s3184_s3 + $0x50] sm:$0xff] }
  0x4b   : > { %2113 = vmatmul.mubr.f32.gmra.mxu0 %v291_v39  ;;  %1461 = vmatprep.subr.mxu1 %v1277_v35  ;;  %v1273_v39 = vld [vmem:[%s3184_s3 + $0x48] sm:$0xff] }
  0x4c   : > { %2115 = vmatprep.mubr.f32.mxu0 %v292_v40  ;;  %1462 = vmatpush1.msra.mxu1 %v1276_v36  ;;  %v1272_v40 = vld [vmem:[%s3184_s3 + $0x40] sm:$0xff] }
  0x4d   : > { %2173 = vmatmul.mubr.f32.gmra.mxu1 %v331_v41  ;;  %1463 = vmatprep.subr.mxu1 %v1275_v37  ;;  %v1271_v41 = vld [vmem:[%s3184_s3 + $0x38] sm:$0xff] }
  0x4e   : > { %2175 = vmatprep.mubr.f32.mxu1 %v332_v42  ;;  %1464 = vmatpush1.msra.mxu1 %v1274_v38  ;;  %v1270_v42 = vld [vmem:[%s3184_s3 + $0x30] sm:$0xff] }
  0x4f   : > { %2116 = vmatmul.mubr.f32.gmra.mxu0 %v293_v43  ;;  %1465 = vmatprep.subr.mxu1 %v1273_v39  ;;  %v1269_v43 = vld [vmem:[%s3184_s3 + $0x28] sm:$0xff] }
  0x50   : > { %2118 = vmatprep.mubr.f32.mxu0 %v294_v44  ;;  %1466 = vmatpush1.msra.mxu1 %v1272_v40  ;;  %v1268_v44 = vld [vmem:[%s3184_s3 + $0x20] sm:$0xff] }
  0x51   : > { %2176 = vmatmul.mubr.f32.gmra.mxu1 %v333_v45  ;;  %1467 = vmatprep.subr.mxu1 %v1271_v41  ;;  %v1267_v45 = vld [vmem:[%s3184_s3 + $0x18] sm:$0xff] }
  0x52   : > { %2178 = vmatprep.mubr.f32.mxu1 %v334_v46  ;;  %1468 = vmatpush1.msra.mxu1 %v1270_v42  ;;  %v1266_v46 = vld [vmem:[%s3184_s3 + $0x10] sm:$0xff] }
  0x53   : > { %2119 = vmatmul.mubr.f32.gmra.mxu0 %v295_v47  ;;  %1469 = vmatprep.subr.mxu1 %v1269_v43  ;;  %v1265_v47 = vld [vmem:[%s3184_s3 + $0x8] sm:$0xff] }
  0x54   : > { %2121 = vmatprep.mubr.f32.mxu0 %v296_v48  ;;  %1470 = vmatpush1.msra.mxu1 %v1268_v44  ;;  %v1264_v48 = vld [vmem:[%s3184_s3] sm:$0xff] }
  0x55   : > { %2179 = vmatmul.mubr.f32.gmra.mxu1 %v335_v49  ;;  %1471 = vmatprep.subr.mxu1 %v1267_v45  ;;  %v2445_v49 = vmov 0.0  }
  0x56   : > { %2181 = vmatprep.mubr.f32.mxu1 %v336_v50  ;;  %1472 = vmatpush1.msra.mxu1 %v1266_v46  ;;  %v2757_v50 = vld [vmem:[%s3183_s2] ss:$0 sm:$0xff] }
  0x57   : > { %2122 = vmatmul.mubr.f32.gmra.mxu0 %v297_v51  ;;  %1473 = vmatprep.subr.mxu1 %v1265_v47 }
  0x58   : > { %2124 = vmatprep.mubr.f32.mxu0 %v298_v52  ;;  %1474 = vmatpush1.msra.mxu1 %v1264_v48 }
  0x59   : > { %2182 = vmatmul.mubr.f32.gmra.mxu1 %v337_v53 }
  0x5a   : > { %2184 = vmatprep.mubr.f32.mxu1 %v338_v54 }
  0x5b   : > { %2125 = vmatmul.mubr.f32.gmra.mxu0 %v299_v55 }
  0x5c   : > { %2127 = vmatprep.mubr.f32.mxu0 %v300_v56 }
  0x5d   : > { %2185 = vmatmul.mubr.f32.gmra.mxu1 %v339_v57 }
  0x5e   : > { %2187 = vmatprep.mubr.f32.mxu1 %v340_v58 }
  0x5f   : > { %2128 = vmatmul.mubr.f32.gmra.mxu0 %v301_v59 }
  0x60   : > { %2130 = vmatprep.mubr.f32.mxu0 %v302_v60 }
  0x61   : > { %2188 = vmatmul.mubr.f32.gmra.mxu1 %v341_v61 }
  0x62   : > { %2190 = vmatprep.mubr.f32.mxu1 %v342_v62 }
  0x63   : > { %2131 = vmatmul.mubr.f32.gmra.mxu0 %v303_v63 }
  0x64   : > { %2133 = vmatprep.mubr.f32.mxu0 %v304_v0 }
  0x65   : > { %2191 = vmatmul.mubr.f32.gmra.mxu1 %v343_v1 }
  0x66   : > { %1507 = vmatprep.mubr.f32.mxu1 %v2445_v49 }
  0x67   : > { %2134 = vmatmul.mubr.f32.gmra.mxu0 %v305_v2 }
  0x68   : > { %2136 = vmatprep.mubr.f32.mxu0 %v306_v3 }
  0x6b   : > { %2137 = vmatmul.mubr.f32.gmra.mxu0 %v307_v4 }
  0x6c   : > { %2139 = vmatprep.mubr.f32.mxu0 %v308_v5 }
  0x6f   : > { %2140 = vmatmul.mubr.f32.gmra.mxu0 %v309_v6 }
  0x70   : > { %2142 = vmatprep.mubr.f32.mxu0 %v310_v7 }
  0x73   : > { %2143 = vmatmul.mubr.f32.gmra.mxu0 %v311_v8 }
  0x74   : > { %2145 = vmatprep.mubr.f32.mxu0 %v312_v9 }
  0x77   : > { %2146 = vmatmul.mubr.f32.gmra.mxu0 %v313_v10 }
  0x78   : > { %2148 = vmatprep.mubr.f32.mxu0 %v314_v11 }
  0x7b   : > { %2149 = vmatmul.mubr.f32.gmra.mxu0 %v315_v12 }
  0x7c   : > { %2151 = vmatprep.mubr.f32.mxu0 %v316_v13 }
  0x7f   : > { %2152 = vmatmul.mubr.f32.gmra.mxu0 %v317_v17 }
  0x80   : > { %2154 = vmatprep.mubr.f32.mxu0 %v318_v19 }
  0x83   : > { %2155 = vmatmul.mubr.f32.gmra.mxu0 %v319_v22 }
  0xf7   : > { %v2099_v51 = vpop.f32.mrf.mxu0 }
  0xf8   : > { %v439_v52 = vadd.f32 %v2099_v51, %v2757_v50 }
  0xf9   : > { %v433_v53 = vpop.f32.mrf.mxu0  ;;  %v2159_v54 = vpop.f32.mrf.mxu1 }
  0xfa   : > { %v753_v55 = vmax.f32 %v439_v52, 0.0  ;;  %v434_v56 = vadd.f32 %v2757_v50, %v433_v53  ;;  %v639_v57 = vadd.f32 %v2159_v54, %v2757_v50 }
  0xfb   : > { %v2102_v58 = vpop.f32.mrf.mxu0  ;;  %v633_v59 = vpop.f32.mrf.mxu1 }
  0xfc   : > { %v822_v60 = vrot.slane %v753_v55, 4  ;;  %v752_v61 = vmax.f32 %v434_v56, 0.0  ;;  %v449_v62 = vadd.f32 %v2102_v58, %v2757_v50  ;;  %v793_v63 = vmax.f32 %v639_v57, 0.0 }
  0xfd   : > { %v443_v0 = vpop.f32.mrf.mxu0  ;;  %v634_v1 = vadd.f32 %v2757_v50, %v633_v59  ;;  %v2162_v6 = vpop.f32.mrf.mxu1 }
  0xfe   : > { %v823_v2 = vadd.f32 %v822_v60, %v753_v55  ;;  %v816_v3 = vrot.slane %v752_v61, 4  ;;  %v755_v4 = vmax.f32 %v449_v62, 0.0  ;;  %v444_v5 = vadd.f32 %v2757_v50, %v443_v0 }
  0xff   : > { %v2105_v7 = vpop.f32.mrf.mxu0  ;;  %v1062_v8 = vrot.slane %v793_v63, 4  ;;  %v792_v9 = vmax.f32 %v634_v1, 0.0  ;;  %v2766_v10 = vadd.f32 %v2162_v6, %v2757_v50 }
 0x100   : > { %v824_v11 = vrot.slane %v823_v2, 2  ;;  %v817_v12 = vadd.f32 %v816_v3, %v752_v61  ;;  %v834_v13 = vrot.slane %v755_v4, 4  ;;  %v754_v14 = vmax.f32 %v444_v5, 0.0 }
 0x101   : > { %v459_v15 = vadd.f32 %v2105_v7, %v2757_v50  ;;  %v453_v16 = vpop.f32.mrf.mxu0  ;;  %v1063_v17 = vadd.f32 %v1062_v8, %v793_v63  ;;  %v1056_v18 = vrot.slane %v792_v9, 4  ;;  %v795_v19 = vmax.f32 %v2766_v10, 0.0 }
 0x102   : > { %v825_v20 = vadd.f32 %v824_v11, %v823_v2  ;;  %v818_v21 = vrot.slane %v817_v12, 2  ;;  %v835_v22 = vadd.f32 %v834_v13, %v755_v4  ;;  %v828_v23 = vrot.slane %v754_v14, 4 }
 0x103   : > { %v757_v24 = vmax.f32 %v459_v15, 0.0  ;;  %v454_v25 = vadd.f32 %v2757_v50, %v453_v16  ;;  %v2108_v26 = vpop.f32.mrf.mxu0  ;;  %v1064_v27 = vrot.slane %v1063_v17, 2  ;;  %v2771_v28 = vadd.f32 %v1056_v18, %v792_v9 }
 0x104   : > { %v826_v29 = vrot.slane %v825_v20, 1  ;;  %v819_v30 = vadd.f32 %v818_v21, %v817_v12  ;;  %v836_v31 = vrot.slane %v835_v22, 2  ;;  %v829_v32 = vadd.f32 %v828_v23, %v754_v14 }
 0x105   : > { %v846_v33 = vrot.slane %v757_v24, 4  ;;  %v756_v34 = vmax.f32 %v454_v25, 0.0  ;;  %v469_v35 = vadd.f32 %v2108_v26, %v2757_v50  ;;  %v463_v36 = vpop.f32.mrf.mxu0  ;;  %v2774_v37 = vadd.f32 %v1064_v27, %v1063_v17 }
 0x106   : > { %v827_v38 = vadd.f32 %v826_v29, %v825_v20  ;;  %v820_v39 = vrot.slane %v819_v30, 1  ;;  %v837_v40 = vadd.f32 %v836_v31, %v835_v22  ;;  %v830_v41 = vrot.slane %v829_v32, 2 }
 0x107   : > { %v847_v42 = vadd.f32 %v846_v33, %v757_v24  ;;  %v840_v43 = vrot.slane %v756_v34, 4  ;;  %v759_v44 = vmax.f32 %v469_v35, 0.0  ;;  %v464_v45 = vadd.f32 %v2757_v50, %v463_v36  ;;  %v2111_v46 = vpop.f32.mrf.mxu0 }
 0x108   : > { %v1201_v47 = vmul.f32 0.125, %v827_v38  ;;  %v821_v48 = vadd.f32 %v820_v39, %v819_v30  ;;  %v838_v51 = vrot.slane %v837_v40, 1  ;;  %v831_v52 = vadd.f32 %v830_v41, %v829_v32 }
 0x109   : > { %v848_v53 = vrot.slane %v847_v42, 2  ;;  %v841_v54 = vadd.f32 %v840_v43, %v756_v34  ;;  %v858_v55 = vrot.slane %v759_v44, 4  ;;  %v758_v56 = vmax.f32 %v464_v45, 0.0  ;;  %v473_v57 = vpop.f32.mrf.mxu0 }
 0x10a   : > { %v1200_v58 = vmul.f32 0.125, %v821_v48  ;;  %v839_v59 = vadd.f32 %v838_v51, %v837_v40  ;;  %v832_v60 = vrot.slane %v831_v52, 1  ;;  %v479_v61 = vadd.f32 %v2111_v46, %v2757_v50 }
 0x10b   : > { %v849_v62 = vadd.f32 %v848_v53, %v847_v42  ;;  %v842_v63 = vrot.slane %v841_v54, 2  ;;  %v859_v0 = vadd.f32 %v858_v55, %v759_v44  ;;  %v852_v1 = vrot.slane %v758_v56, 4  ;;  %v2114_v2 = vpop.f32.mrf.mxu0 }
 0x10c   : > { %v1373_v3 = vsel %vm1372_vm0, %v1201_v47, %v1200_v58  ;;  %v1203_v4 = vmul.f32 0.125, %v839_v59  ;;  %v833_v5 = vadd.f32 %v832_v60, %v831_v52  ;;  %v761_v6 = vmax.f32 %v479_v61, 0.0 }
 0x10d   : > { %v850_v7 = vrot.slane %v849_v62, 1  ;;  %v843_v8 = vadd.f32 %v842_v63, %v841_v54  ;;  %v860_v9 = vrot.slane %v859_v0, 2  ;;  %v853_v11 = vadd.f32 %v852_v1, %v758_v56  ;;  %v483_v12 = vpop.f32.mrf.mxu0 }
 0x10e   : > { %v1202_v13 = vmul.f32 0.125, %v833_v5  ;;  %v870_v14 = vrot.slane %v761_v6, 4  ;;  %v474_v15 = vadd.f32 %v2757_v50, %v473_v57  ;;  %v489_v16 = vadd.f32 %v2114_v2, %v2757_v50 }
 0x10f   : > { %v851_v17 = vadd.f32 %v850_v7, %v849_v62  ;;  %v844_v18 = vrot.slane %v843_v8, 1  ;;  %v861_v20 = vadd.f32 %v860_v9, %v859_v0  ;;  %v854_v21 = vrot.slane %v853_v11, 2  ;;  %v2117_v22 = vpop.f32.mrf.mxu0 }
 0x110   : > { %v1375_v23 = vsel %vm1374_vm1, %v1202_v13, %v1373_v3  ;;  %v871_v24 = vadd.f32 %v870_v14, %v761_v6  ;;  %v760_v25 = vmax.f32 %v474_v15, 0.0  ;;  %v763_v26 = vmax.f32 %v489_v16, 0.0 }
 0x111   : > { %v2782_v27 = vmul.f32 0.125, %v851_v17  ;;  %v845_v29 = vadd.f32 %v844_v18, %v843_v8  ;;  %v1377_v30 = vsel %vm1376_vm2, %v1203_v4, %v1375_v23  ;;  %v862_v31 = vrot.slane %v861_v20, 1  ;;  %v493_v32 = vpop.f32.mrf.mxu0 }
 0x112   : > { %v855_v33 = vadd.f32 %v854_v21, %v853_v11  ;;  %v872_v34 = vrot.slane %v871_v24, 2  ;;  %v864_v35 = vrot.slane %v760_v25, 4  ;;  %v882_v36 = vrot.slane %v763_v26, 4 }
 0x113   : > { %v1204_v38 = vmul.f32 0.125, %v845_v29  ;;  %v863_v39 = vadd.f32 %v862_v31, %v861_v20  ;;  %v484_v40 = vadd.f32 %v2757_v50, %v483_v12  ;;  %v499_v41 = vadd.f32 %v2117_v22, %v2757_v50  ;;  %v2120_v42 = vpop.f32.mrf.mxu0 }
 0x114   : > { %v856_v43 = vrot.slane %v855_v33, 1  ;;  %v873_v44 = vadd.f32 %v872_v34, %v871_v24  ;;  %v865_v45 = vadd.f32 %v864_v35, %v760_v25  ;;  %v883_v46 = vadd.f32 %v882_v36, %v763_v26 }
 0x115   : > { %v2788_v47 = vsel %vm1378_vm3, %v1204_v38, %v1377_v30  ;;  %v2790_v48 = vmul.f32 0.125, %v863_v39  ;;  %v762_v51 = vmax.f32 %v484_v40, 0.0  ;;  %v765_v52 = vmax.f32 %v499_v41, 0.0  ;;  %v503_v53 = vpop.f32.mrf.mxu0 }
 0x116   : > { %v857_v54 = vadd.f32 %v856_v43, %v855_v33  ;;  %v874_v55 = vrot.slane %v873_v44, 1  ;;  %v866_v56 = vrot.slane %v865_v45, 2  ;;  %v884_v57 = vrot.slane %v883_v46, 2 }
 0x117   : > { %v876_v58 = vrot.slane %v762_v51, 4  ;;  %v894_v59 = vrot.slane %v765_v52, 4  ;;  %v494_v60 = vadd.f32 %v2757_v50, %v493_v32  ;;  %v509_v61 = vadd.f32 %v2120_v42, %v2757_v50  ;;  %v2123_v62 = vpop.f32.mrf.mxu0 }
 0x118   : > { %v1206_v63 = vmul.f32 0.125, %v857_v54  ;;  %v875_v0 = vadd.f32 %v874_v55, %v873_v44  ;;  %v867_v1 = vadd.f32 %v866_v56, %v865_v45  ;;  %v885_v2 = vadd.f32 %v884_v57, %v883_v46 }
 0x119   : > { %v877_v3 = vadd.f32 %v876_v58, %v762_v51  ;;  %v895_v4 = vadd.f32 %v894_v59, %v765_v52  ;;  %v764_v5 = vmax.f32 %v494_v60, 0.0  ;;  %v767_v6 = vmax.f32 %v509_v61, 0.0  ;;  %v513_v7 = vpop.f32.mrf.mxu0 }
 0x11a   : > { %v1209_v8 = vmul.f32 0.125, %v875_v0  ;;  %v868_v9 = vrot.slane %v867_v1, 1  ;;  %v886_v11 = vrot.slane %v885_v2, 1  ;;  %v504_v12 = vadd.f32 %v2757_v50, %v503_v53 }
 0x11b   : > { %v878_v13 = vrot.slane %v877_v3, 2  ;;  %v896_v14 = vrot.slane %v895_v4, 2  ;;  %v888_v15 = vrot.slane %v764_v5, 4  ;;  %v906_v16 = vrot.slane %v767_v6, 4  ;;  %v2126_v17 = vpop.f32.mrf.mxu0 }
 0x11c   : > { %v869_v18 = vadd.f32 %v868_v9, %v867_v1  ;;  %v887_v20 = vadd.f32 %v886_v11, %v885_v2  ;;  %v766_v21 = vmax.f32 %v504_v12, 0.0  ;;  %v519_v22 = vadd.f32 %v2123_v62, %v2757_v50 }
 0x11d   : > { %v879_v23 = vadd.f32 %v878_v13, %v877_v3  ;;  %v897_v24 = vadd.f32 %v896_v14, %v895_v4  ;;  %v889_v25 = vadd.f32 %v888_v15, %v764_v5  ;;  %v907_v26 = vadd.f32 %v906_v16, %v767_v6  ;;  %v523_v29 = vpop.f32.mrf.mxu0 }
 0x11e   : > { %v1208_v30 = vmul.f32 0.125, %v869_v18  ;;  %v2796_v31 = vmul.f32 0.125, %v887_v20  ;;  %v900_v32 = vrot.slane %v766_v21, 4  ;;  %v769_v33 = vmax.f32 %v519_v22, 0.0 }
 0x11f   : > { %v880_v34 = vrot.slane %v879_v23, 1  ;;  %v898_v35 = vrot.slane %v897_v24, 1  ;;  %v890_v36 = vrot.slane %v889_v25, 2  ;;  %v908_v38 = vrot.slane %v907_v26, 2  ;;  %v2129_v39 = vpop.f32.mrf.mxu0 }
 0x120   : > { %v1386_v40 = vsel %vm1372_vm0, %v1209_v8, %v1208_v30  ;;  %v901_v41 = vadd.f32 %v900_v32, %v766_v21  ;;  %v918_v42 = vrot.slane %v769_v33, 4  ;;  %v514_v43 = vadd.f32 %v2757_v50, %v513_v7 }
 0x121   : > { %v881_v44 = vadd.f32 %v880_v34, %v879_v23  ;;  %v899_v45 = vadd.f32 %v898_v35, %v897_v24  ;;  %v891_v46 = vadd.f32 %v890_v36, %v889_v25  ;;  %v2800_v51 = vadd.f32 %v908_v38, %v907_v26  ;;  %v533_v56 = vpop.f32.mrf.mxu0 }
 0x122   : > { %v902_v52 = vrot.slane %v901_v41, 2  ;;  %v919_v53 = vadd.f32 %v918_v42, %v769_v33  ;;  %v768_v54 = vmax.f32 %v514_v43, 0.0  ;;  %v1381_v55 = vsel %vm1380_vm4, %v2782_v27, %v2788_v47 }
 0x123   : > { %v1210_v57 = vmul.f32 0.125, %v881_v44  ;;  %v2805_v58 = vmul.f32 0.125, %v899_v45  ;;  %v892_v59 = vrot.slane %v891_v46, 1  ;;  %v910_v60 = vrot.slane %v2800_v51, 1  ;;  %v2132_v8 = vpop.f32.mrf.mxu0 }
 0x124   : > { %v903_v61 = vadd.f32 %v902_v52, %v901_v41  ;;  %v920_v62 = vrot.slane %v919_v53, 2  ;;  %v912_v0 = vrot.slane %v768_v54, 4  ;;  %v1383_v1 = vsel %vm1382_vm5, %v1206_v63, %v1381_v55 }
 0x125   : > { %v2810_v2 = vsel %vm1374_vm1, %v1210_v57, %v1386_v40  ;;  %v893_v3 = vadd.f32 %v892_v59, %v891_v46  ;;  %v1385_v4 = vsel %vm1384_vm6, %v2790_v48, %v1383_v1  ;;  %v529_v27 = vadd.f32 %v2126_v17, %v2757_v50  ;;  %v543_v32 = vpop.f32.mrf.mxu0 }
 0x126   : > { %v904_v47 = vrot.slane %v903_v61, 1  ;;  %v921_v5 = vadd.f32 %v920_v62, %v919_v53  ;;  %v913_v6 = vadd.f32 %v912_v0, %v768_v54  ;;  %1508 = vmatmul.mubr.f32.vlgmr.msra.gmra.mxu1 %v1385_v4  ;;  %v524_v7 = vadd.f32 %v2757_v50, %v523_v29 }
 0x127   : > { %v2816_v9 = vmul.f32 0.125, %v893_v3  ;;  %v771_v11 = vmax.f32 %v529_v27, 0.0  ;;  %v539_v63 = vadd.f32 %v2129_v39, %v2757_v50  ;;  %v534_v12 = vadd.f32 %v2757_v50, %v533_v56  ;;  %1513 = vmatprep.mubr.f32.mxu1 %v2445_v49 }
 0x128   : > { %v905_v13 = vadd.f32 %v904_v47, %v903_v61  ;;  %v922_v48 = vrot.slane %v921_v5, 1  ;;  %v914_v14 = vrot.slane %v913_v6, 2  ;;  %v770_v15 = vmax.f32 %v524_v7, 0.0  ;;  %v2135_v61 = vpop.f32.mrf.mxu0 }
 0x129   : > { %v930_v16 = vrot.slane %v771_v11, 4  ;;  %v773_v17 = vmax.f32 %v539_v63, 0.0  ;;  %v772_v18 = vmax.f32 %v534_v12, 0.0  ;;  %v549_v20 = vadd.f32 %v2132_v8, %v2757_v50 }
 0x12a   : > { %v2822_v21 = vmul.f32 0.125, %v905_v13  ;;  %v923_v22 = vadd.f32 %v922_v48, %v921_v5  ;;  %v915_v23 = vadd.f32 %v914_v14, %v913_v6  ;;  %v924_v24 = vrot.slane %v770_v15, 4  ;;  %v553_v48 = vpop.f32.mrf.mxu0 }
 0x12b   : > { %v931_v25 = vadd.f32 %v930_v16, %v771_v11  ;;  %v942_v26 = vrot.slane %v773_v17, 4  ;;  %v936_v29 = vrot.slane %v772_v18, 4  ;;  %v775_v30 = vmax.f32 %v549_v20, 0.0 }
 0x12c   : > { %v1217_v33 = vmul.f32 0.125, %v923_v22  ;;  %v916_v34 = vrot.slane %v915_v23, 1  ;;  %v925_v35 = vadd.f32 %v924_v24, %v770_v15  ;;  %v1066_v36 = vrot.slane %v2774_v37, 1 }
 0x12d   : > { %v932_v38 = vrot.slane %v931_v25, 2  ;;  %v943_v39 = vadd.f32 %v942_v26, %v773_v17  ;;  %v937_v40 = vadd.f32 %v936_v29, %v772_v18  ;;  %v954_v41 = vrot.slane %v775_v30, 4  ;;  %v643_v29 = vpop.f32.mrf.mxu1 }
 0x12e   : > { %v917_v42 = vadd.f32 %v916_v34, %v915_v23  ;;  %v926_v43 = vrot.slane %v925_v35, 2  ;;  %v1067_v44 = vadd.f32 %v1066_v36, %v2774_v37  ;;  %v544_v45 = vadd.f32 %v2757_v50, %v543_v32 }
 0x12f   : > { %v933_v46 = vadd.f32 %v932_v38, %v931_v25  ;;  %v944_v52 = vrot.slane %v943_v39, 2  ;;  %v938_v53 = vrot.slane %v937_v40, 2  ;;  %v955_v54 = vadd.f32 %v954_v41, %v775_v30 }
 0x130   : > { %v1216_v55 = vmul.f32 0.125, %v917_v42  ;;  %v927_v56 = vadd.f32 %v926_v43, %v925_v35  ;;  %v1241_v57 = vmul.f32 0.125, %v1067_v44  ;;  %v774_v59 = vmax.f32 %v544_v45, 0.0 }
 0x131   : > { %v934_v62 = vrot.slane %v933_v46, 1  ;;  %v945_v0 = vadd.f32 %v944_v52, %v943_v39  ;;  %v939_v1 = vadd.f32 %v938_v53, %v937_v40  ;;  %v956_v3 = vrot.slane %v955_v54, 2  ;;  %v2138_v40 = vpop.f32.mrf.mxu0 }
 0x132   : > { %v1393_v4 = vsel %vm1372_vm0, %v1217_v33, %v1216_v55  ;;  %v928_v27 = vrot.slane %v927_v56, 1  ;;  %v948_v47 = vrot.slane %v774_v59, 4  ;;  %v1058_v37 = vrot.slane %v2771_v28, 2 }
 0x133   : > { %v935_v5 = vadd.f32 %v934_v62, %v933_v46  ;;  %v946_v6 = vrot.slane %v945_v0, 1  ;;  %v940_v7 = vrot.slane %v939_v1, 1  ;;  %v2829_v8 = vadd.f32 %v956_v3, %v955_v54 }
 0x134   : > { %v929_v11 = vadd.f32 %v928_v27, %v927_v56  ;;  %v949_v63 = vadd.f32 %v948_v47, %v774_v59  ;;  %v1059_v12 = vadd.f32 %v1058_v37, %v2771_v28  ;;  %v559_v13 = vadd.f32 %v2135_v61, %v2757_v50 }
 0x135   : > { %v2833_v14 = vmul.f32 0.125, %v935_v5  ;;  %v947_v15 = vadd.f32 %v946_v6, %v945_v0  ;;  %v941_v16 = vadd.f32 %v940_v7, %v939_v1  ;;  %v958_v17 = vrot.slane %v2829_v8, 1 }
 0x136   : > { %v1218_v18 = vmul.f32 0.125, %v929_v11  ;;  %v950_v20 = vrot.slane %v949_v63, 2  ;;  %v1060_v22 = vrot.slane %v1059_v12, 1  ;;  %v777_v23 = vmax.f32 %v559_v13, 0.0 }
 0x137   : > { %v2836_v24 = vmul.f32 0.125, %v947_v15  ;;  %v2838_v25 = vmul.f32 0.125, %v941_v16  ;;  %v1074_v28 = vrot.slane %v795_v19, 4  ;;  %v554_v26 = vadd.f32 %v2757_v50, %v553_v48 }
 0x138   : > { %v2844_v30 = vsel %vm1374_vm1, %v1218_v18, %v1393_v4  ;;  %v951_v32 = vadd.f32 %v950_v20, %v949_v63  ;;  %v1061_v33 = vadd.f32 %v1060_v22, %v1059_v12  ;;  %v966_v34 = vrot.slane %v777_v23, 4 }
 0x139   : > { %v1075_v35 = vadd.f32 %v1074_v28, %v795_v19  ;;  %v776_v36 = vmax.f32 %v554_v26, 0.0  ;;  %v644_v38 = vadd.f32 %v2757_v50, %v643_v29  ;;  %v911_v39 = vadd.f32 %v910_v60, %v2800_v51  ;;  %v2165_v19 = vpop.f32.mrf.mxu1 }
 0x13a   : > { %v952_v41 = vrot.slane %v951_v32, 1  ;;  %v1240_v42 = vmul.f32 0.125, %v1061_v33  ;;  %v967_v43 = vadd.f32 %v966_v34, %v777_v23  ;;  %v1388_v44 = vsel %vm1376_vm2, %v2796_v31, %v2810_v2  ;;  %v563_v31 = vpop.f32.mrf.mxu0 }
 0x13b   : > { %v1076_v45 = vrot.slane %v1075_v35, 2  ;;  %v960_v46 = vrot.slane %v776_v36, 4  ;;  %v794_v52 = vmax.f32 %v644_v38, 0.0  ;;  %v1215_v10 = vmul.f32 0.125, %v911_v39  ;;  %v653_v27 = vpop.f32.mrf.mxu1 }
 0x13c   : > { %v953_v53 = vadd.f32 %v952_v41, %v951_v32  ;;  %v2856_v54 = vsel %vm1372_vm0, %v1241_v57, %v1240_v42  ;;  %v968_v55 = vrot.slane %v967_v43, 2  ;;  %v1389_v51 = vsel %vm1378_vm3, %v2816_v9, %v1388_v44  ;;  %v2141_v63 = vpop.f32.mrf.mxu0 }
 0x13d   : > { %v1077_v60 = vadd.f32 %v1076_v45, %v1075_v35  ;;  %v961_v56 = vadd.f32 %v960_v46, %v776_v36  ;;  %v1068_v59 = vrot.slane %v794_v52, 4  ;;  %v1390_v61 = vsel %vm1380_vm4, %v2805_v58, %v1389_v51  ;;  %v2168_v23 = vpop.f32.mrf.mxu1 }
 0x13e   : > { %v2862_v2 = vmul.f32 0.125, %v953_v53  ;;  %v969_v62 = vadd.f32 %v968_v55, %v967_v43  ;;  %v1391_v0 = vsel %vm1382_vm5, %v2822_v21, %v1390_v61  ;;  %v569_v57 = vadd.f32 %v2138_v40, %v2757_v50  ;;  %v573_v38 = vpop.f32.mrf.mxu0 }
 0x13f   : > { %v1078_v1 = vrot.slane %v1077_v60, 1  ;;  %v962_v3 = vrot.slane %v961_v56, 2  ;;  %v1069_v4 = vadd.f32 %v1068_v59, %v794_v52  ;;  %v1392_v9 = vsel %vm1384_vm6, %v1215_v10, %v1391_v0  ;;  %v663_v52 = vpop.f32.mrf.mxu1 }
 0x140   : > { %v970_v47 = vrot.slane %v969_v62, 1  ;;  %1514 = vmatmul.mubr.f32.gmra.mxu1 %v1392_v9  ;;  %v779_v37 = vmax.f32 %v569_v57, 0.0  ;;  %v659_v58 = vadd.f32 %v2165_v19, %v2757_v50  ;;  %v564_v5 = vadd.f32 %v2757_v50, %v563_v31  ;;  %v2144_v61 = vpop.f32.mrf.mxu0 }
 0x141   : > { %v1079_v6 = vadd.f32 %v1078_v1, %v1077_v60  ;;  %v963_v7 = vadd.f32 %v962_v3, %v961_v56  ;;  %v1070_v11 = vrot.slane %v1069_v4, 2  ;;  %v654_v21 = vadd.f32 %v2757_v50, %v653_v27  ;;  %1519 = vmatprep.mubr.f32.mxu1 %v2445_v49  ;;  %v2171_v27 = vpop.f32.mrf.mxu1 }
 0x142   : > { %v971_v12 = vadd.f32 %v970_v47, %v969_v62  ;;  %v978_v13 = vrot.slane %v779_v37, 4  ;;  %v797_v48 = vmax.f32 %v659_v58, 0.0  ;;  %v778_v15 = vmax.f32 %v564_v5, 0.0 }
 0x143   : > { %v2872_v16 = vmul.f32 0.125, %v1079_v6  ;;  %v964_v18 = vrot.slane %v963_v7, 1  ;;  %v1071_v20 = vadd.f32 %v1070_v11, %v1069_v4  ;;  %v796_v22 = vmax.f32 %v654_v21, 0.0 }
 0x144   : > { %v1225_v28 = vmul.f32 0.125, %v971_v12  ;;  %v979_v26 = vadd.f32 %v978_v13, %v779_v37  ;;  %v1086_v29 = vrot.slane %v797_v48, 4  ;;  %v972_v32 = vrot.slane %v778_v15, 4 }
 0x145   : > { %v965_v33 = vadd.f32 %v964_v18, %v963_v7  ;;  %v1072_v34 = vrot.slane %v1071_v20, 1  ;;  %v1080_v35 = vrot.slane %v796_v22, 4  ;;  %v579_v36 = vadd.f32 %v2141_v63, %v2757_v50  ;;  %v583_v63 = vpop.f32.mrf.mxu0 }
 0x146   : > { %v980_v39 = vrot.slane %v979_v26, 2  ;;  %v1087_v40 = vadd.f32 %v1086_v29, %v797_v48  ;;  %v973_v41 = vadd.f32 %v972_v32, %v778_v15  ;;  %v669_v42 = vadd.f32 %v2168_v23, %v2757_v50  ;;  %v673_v23 = vpop.f32.mrf.mxu1 }
 0x147   : > { %v1224_v43 = vmul.f32 0.125, %v965_v33  ;;  %v1073_v44 = vadd.f32 %v1072_v34, %v1071_v20  ;;  %v1081_v45 = vadd.f32 %v1080_v35, %v796_v22  ;;  %v781_v46 = vmax.f32 %v579_v36, 0.0 }
 0x148   : > { %v981_v10 = vadd.f32 %v980_v39, %v979_v26  ;;  %v1088_v19 = vrot.slane %v1087_v40, 2  ;;  %v974_v53 = vrot.slane %v973_v41, 2  ;;  %v799_v55 = vmax.f32 %v669_v42, 0.0 }
 0x149   : > { %v1400_v51 = vsel %vm1372_vm0, %v1225_v28, %v1224_v43  ;;  %v1242_v60 = vmul.f32 0.125, %v1073_v44  ;;  %v1082_v56 = vrot.slane %v1081_v45, 2  ;;  %v990_v59 = vrot.slane %v781_v46, 4 }
 0x14a   : > { %v982_v31 = vrot.slane %v981_v10, 1  ;;  %v1089_v62 = vadd.f32 %v1088_v19, %v1087_v40  ;;  %v975_v0 = vadd.f32 %v974_v53, %v973_v41  ;;  %v1098_v57 = vrot.slane %v799_v55, 4 }
 0x14b   : > { %v2879_v1 = vsel %vm1374_vm1, %v1242_v60, %v2856_v54  ;;  %v1083_v3 = vadd.f32 %v1082_v56, %v1081_v45  ;;  %v991_v4 = vadd.f32 %v990_v59, %v781_v46  ;;  %v574_v9 = vadd.f32 %v2757_v50, %v573_v38  ;;  %v2147_v38 = vpop.f32.mrf.mxu0 }
 0x14c   : > { %v983_v47 = vadd.f32 %v982_v31, %v981_v10  ;;  %v1090_v37 = vrot.slane %v1089_v62, 1  ;;  %v976_v58 = vrot.slane %v975_v0, 1  ;;  %v1099_v5 = vadd.f32 %v1098_v57, %v799_v55 }
 0x14d   : > { %v1084_v6 = vrot.slane %v1083_v3, 1  ;;  %v992_v7 = vrot.slane %v991_v4, 2  ;;  %v780_v11 = vmax.f32 %v574_v9, 0.0  ;;  %v664_v21 = vadd.f32 %v2757_v50, %v663_v52  ;;  %v2174_v52 = vpop.f32.mrf.mxu1 }
 0x14e   : > { %v2883_v12 = vmul.f32 0.125, %v983_v47  ;;  %v1091_v13 = vadd.f32 %v1090_v37, %v1089_v62  ;;  %v977_v54 = vadd.f32 %v976_v58, %v975_v0  ;;  %v1100_v48 = vrot.slane %v1099_v5, 2 }
 0x14f   : > { %v1085_v15 = vadd.f32 %v1084_v6, %v1083_v3  ;;  %v993_v18 = vadd.f32 %v992_v7, %v991_v4  ;;  %v984_v20 = vrot.slane %v780_v11, 4  ;;  %v798_v22 = vmax.f32 %v664_v21, 0.0 }
 0x150   : > { %v2885_v28 = vmul.f32 0.125, %v1091_v13  ;;  %v1226_v26 = vmul.f32 0.125, %v977_v54  ;;  %v2887_v29 = vadd.f32 %v1100_v48, %v1099_v5  ;;  %v589_v32 = vadd.f32 %v2144_v61, %v2757_v50 }
 0x151   : > { %v2890_v33 = vmul.f32 0.125, %v1085_v15  ;;  %v994_v34 = vrot.slane %v993_v18, 1  ;;  %v985_v35 = vadd.f32 %v984_v20, %v780_v11  ;;  %v1092_v36 = vrot.slane %v798_v22, 4  ;;  %v593_v15 = vpop.f32.mrf.mxu0 }
 0x152   : > { %v2893_v39 = vsel %vm1374_vm1, %v1226_v26, %v1400_v51  ;;  %v1102_v40 = vrot.slane %v2887_v29, 1  ;;  %v783_v41 = vmax.f32 %v589_v32, 0.0  ;;  %v679_v42 = vadd.f32 %v2171_v27, %v2757_v50  ;;  %v683_v27 = vpop.f32.mrf.mxu1 }
 0x153   : > { %v995_v43 = vadd.f32 %v994_v34, %v993_v18  ;;  %v986_v44 = vrot.slane %v985_v35, 2  ;;  %v1093_v45 = vadd.f32 %v1092_v36, %v798_v22  ;;  %v584_v46 = vadd.f32 %v2757_v50, %v583_v63 }
 0x154   : > { %v1002_v10 = vrot.slane %v783_v41, 4  ;;  %v801_v19 = vmax.f32 %v679_v42, 0.0  ;;  %v674_v53 = vadd.f32 %v2757_v50, %v673_v23  ;;  %v599_v55 = vadd.f32 %v2147_v38, %v2757_v50  ;;  %v2177_v26 = vpop.f32.mrf.mxu1 }
 0x155   : > { %v2900_v60 = vmul.f32 0.125, %v995_v43  ;;  %v987_v51 = vadd.f32 %v986_v44, %v985_v35  ;;  %v1094_v56 = vrot.slane %v1093_v45, 2  ;;  %v782_v59 = vmax.f32 %v584_v46, 0.0 }
 0x156   : > { %v1003_v61 = vadd.f32 %v1002_v10, %v783_v41  ;;  %v1110_v31 = vrot.slane %v801_v19, 4  ;;  %v800_v62 = vmax.f32 %v674_v53, 0.0  ;;  %v785_v0 = vmax.f32 %v599_v55, 0.0  ;;  %v2150_v10 = vpop.f32.mrf.mxu0 }
 0x157   : > { %v988_v57 = vrot.slane %v987_v51, 1  ;;  %v1095_v3 = vadd.f32 %v1094_v56, %v1093_v45  ;;  %v996_v4 = vrot.slane %v782_v59, 4  ;;  %v689_v9 = vadd.f32 %v2174_v52, %v2757_v50  ;;  %v693_v56 = vpop.f32.mrf.mxu1 }
 0x158   : > { %v1004_v47 = vrot.slane %v1003_v61, 2  ;;  %v1111_v37 = vadd.f32 %v1110_v31, %v801_v19  ;;  %v1104_v58 = vrot.slane %v800_v62, 4  ;;  %v1014_v5 = vrot.slane %v785_v0, 4 }
 0x159   : > { %v989_v6 = vadd.f32 %v988_v57, %v987_v51  ;;  %v1096_v7 = vrot.slane %v1095_v3, 1  ;;  %v997_v11 = vadd.f32 %v996_v4, %v782_v59  ;;  %v803_v21 = vmax.f32 %v689_v9, 0.0 }
 0x15a   : > { %v2903_v63 = vadd.f32 %v1004_v47, %v1003_v61  ;;  %v1112_v13 = vrot.slane %v1111_v37, 2  ;;  %v1105_v54 = vadd.f32 %v1104_v58, %v800_v62  ;;  %v1015_v48 = vadd.f32 %v1014_v5, %v785_v0  ;;  %v603_v58 = vpop.f32.mrf.mxu0 }
 0x15b   : > { %v2905_v18 = vmul.f32 0.125, %v989_v6  ;;  %v1097_v20 = vadd.f32 %v1096_v7, %v1095_v3  ;;  %v998_v22 = vrot.slane %v997_v11, 2  ;;  %v1122_v23 = vrot.slane %v803_v21, 4 }
 0x15c   : > { %v1006_v32 = vrot.slane %v2903_v63, 1  ;;  %v1113_v34 = vadd.f32 %v1112_v13, %v1111_v37  ;;  %v1106_v35 = vrot.slane %v1105_v54, 2  ;;  %v1016_v36 = vrot.slane %v1015_v48, 2 }
 0x15d   : > { %v2908_v38 = vmul.f32 0.125, %v1097_v20  ;;  %v999_v41 = vadd.f32 %v998_v22, %v997_v11  ;;  %v1123_v42 = vadd.f32 %v1122_v23, %v803_v21  ;;  %v594_v43 = vadd.f32 %v2757_v50, %v593_v15 }
 0x15e   : > { %v1114_v44 = vrot.slane %v1113_v34, 1  ;;  %v1107_v45 = vadd.f32 %v1106_v35, %v1105_v54  ;;  %v1017_v46 = vadd.f32 %v1016_v36, %v1015_v48  ;;  %v684_v52 = vadd.f32 %v2757_v50, %v683_v27  ;;  %v2153_v35 = vpop.f32.mrf.mxu0 }
 0x15f   : > { %v1000_v19 = vrot.slane %v999_v41, 1  ;;  %v1124_v53 = vrot.slane %v1123_v42, 2  ;;  %v784_v55 = vmax.f32 %v594_v43, 0.0  ;;  %v959_v51 = vadd.f32 %v958_v17, %v2829_v8  ;;  %v2180_v17 = vpop.f32.mrf.mxu1 }
 0x160   : > { %v1115_v59 = vadd.f32 %v1114_v44, %v1113_v34  ;;  %v1108_v61 = vrot.slane %v1107_v45, 1  ;;  %v1018_v31 = vrot.slane %v1017_v46, 1  ;;  %v802_v62 = vmax.f32 %v684_v52, 0.0 }
 0x161   : > { %v1001_v0 = vadd.f32 %v1000_v19, %v999_v41  ;;  %v1125_v57 = vadd.f32 %v1124_v53, %v1123_v42  ;;  %v1008_v3 = vrot.slane %v784_v55, 4  ;;  %v1223_v4 = vmul.f32 0.125, %v959_v51  ;;  %v703_v43 = vpop.f32.mrf.mxu1 }
 0x162   : > { %v1249_v9 = vmul.f32 0.125, %v1115_v59  ;;  %v1109_v47 = vadd.f32 %v1108_v61, %v1107_v45  ;;  %v1019_v27 = vadd.f32 %v1018_v31, %v1017_v46  ;;  %v1116_v37 = vrot.slane %v802_v62, 4 }
 0x163   : > { %v2915_v5 = vmul.f32 0.125, %v1001_v0  ;;  %v1126_v6 = vrot.slane %v1125_v57, 1  ;;  %v1009_v7 = vadd.f32 %v1008_v3, %v784_v55  ;;  %v1395_v8 = vsel %vm1376_vm2, %v2833_v14, %v2844_v30  ;;  %v2183_v0 = vpop.f32.mrf.mxu1 }
 0x164   : > { %v1248_v11 = vmul.f32 0.125, %v1109_v47  ;;  %v1233_v21 = vmul.f32 0.125, %v1019_v27  ;;  %v1117_v13 = vadd.f32 %v1116_v37, %v802_v62  ;;  %v1396_v54 = vsel %vm1378_vm3, %v2838_v25, %v1395_v8 }
 0x165   : > { %v1127_v48 = vadd.f32 %v1126_v6, %v1125_v57  ;;  %v1010_v15 = vrot.slane %v1009_v7, 2  ;;  %v1397_v20 = vsel %vm1380_vm4, %v2836_v24, %v1396_v54  ;;  %v609_v22 = vadd.f32 %v2150_v10, %v2757_v50 }
 0x166   : > { %v1421_v23 = vsel %vm1372_vm0, %v1249_v9, %v1248_v11  ;;  %v1118_v34 = vrot.slane %v1117_v13, 2  ;;  %v1398_v14 = vsel %vm1382_vm5, %v2862_v2, %v1397_v20  ;;  %v699_v30 = vadd.f32 %v2177_v26, %v2757_v50 }
 0x167   : > { %v2929_v36 = vmul.f32 0.125, %v1127_v48  ;;  %v1011_v41 = vadd.f32 %v1010_v15, %v1009_v7  ;;  %v1399_v25 = vsel %vm1384_vm6, %v1223_v4, %v1398_v14  ;;  %v787_v42 = vmax.f32 %v609_v22, 0.0  ;;  %v713_v48 = vpop.f32.mrf.mxu1 }
 0x168   : > { %v1119_v44 = vadd.f32 %v1118_v34, %v1117_v13  ;;  %1520 = vmatmul.mubr.f32.gmra.mxu1 %v1399_v25  ;;  %v805_v24 = vmax.f32 %v699_v30, 0.0  ;;  %v604_v45 = vadd.f32 %v2757_v50, %v603_v58  ;;  %v694_v46 = vadd.f32 %v2757_v50, %v693_v56 }
 0x169   : > { %v1012_v52 = vrot.slane %v1011_v41, 1  ;;  %v1026_v10 = vrot.slane %v787_v42, 4  ;;  %v619_v2 = vadd.f32 %v2153_v35, %v2757_v50  ;;  %v709_v26 = vadd.f32 %v2180_v17, %v2757_v50  ;;  %1525 = vmatprep.mubr.f32.mxu1 %v2445_v49  ;;  %v613_v50 = vpop.f32.mrf.mxu0 }
 0x16a   : > { %v1120_v19 = vrot.slane %v1119_v44, 1  ;;  %v1134_v53 = vrot.slane %v805_v24, 4  ;;  %v786_v55 = vmax.f32 %v604_v45, 0.0  ;;  %v804_v51 = vmax.f32 %v694_v46, 0.0 }
 0x16b   : > { %v1013_v59 = vadd.f32 %v1012_v52, %v1011_v41  ;;  %v1027_v61 = vadd.f32 %v1026_v10, %v787_v42  ;;  %v789_v31 = vmax.f32 %v619_v2, 0.0  ;;  %v807_v62 = vmax.f32 %v709_v26, 0.0  ;;  %v2944_v41 = vld [vmem:[%s3183_s2] ss:$0 sm:$0xff]  ;;  %v2156_v25 = vpop.f32.mrf.mxu0  ;;  %v2186_v2 = vpop.f32.mrf.mxu1 }
 0x16c   : > { %v1121_v57 = vadd.f32 %v1120_v19, %v1119_v44  ;;  %v1135_v3 = vadd.f32 %v1134_v53, %v805_v24  ;;  %v1020_v56 = vrot.slane %v786_v55, 4  ;;  %v1128_v4 = vrot.slane %v804_v51, 4 }
 0x16d   : > { %v1232_v9 = vmul.f32 0.125, %v1013_v59  ;;  %v1028_v47 = vrot.slane %v1027_v61, 2  ;;  %v1038_v27 = vrot.slane %v789_v31, 4  ;;  %v1146_v37 = vrot.slane %v807_v62, 4 }
 0x16e   : > { %v1250_v58 = vmul.f32 0.125, %v1121_v57  ;;  %v1136_v6 = vrot.slane %v1135_v3, 2  ;;  %v1021_v7 = vadd.f32 %v1020_v56, %v786_v55  ;;  %v1129_v8 = vadd.f32 %v1128_v4, %v804_v51 }
 0x16f   : > { %v1407_v17 = vsel %vm1372_vm0, %v1233_v21, %v1232_v9  ;;  %v1029_v11 = vadd.f32 %v1028_v47, %v1027_v61  ;;  %v1039_v13 = vadd.f32 %v1038_v27, %v789_v31  ;;  %v1147_v54 = vadd.f32 %v1146_v37, %v807_v62  ;;  %v623_v62 = vpop.f32.mrf.mxu0  ;;  %v723_v37 = vpop.f32.mrf.mxu1 }
 0x170   : > { %v2939_v15 = vsel %vm1374_vm1, %v1250_v58, %v1421_v23  ;;  %v1137_v20 = vadd.f32 %v1136_v6, %v1135_v3  ;;  %v1022_v22 = vrot.slane %v1021_v7, 2  ;;  %v1130_v34 = vrot.slane %v1129_v8, 2 }
 0x171   : > { %v1030_v14 = vrot.slane %v1029_v11, 1  ;;  %v1040_v30 = vrot.slane %v1039_v13, 2  ;;  %v1148_v35 = vrot.slane %v1147_v54, 2  ;;  %v614_v21 = vadd.f32 %v2944_v41, %v613_v50 }
 0x172   : > { %v1138_v42 = vrot.slane %v1137_v20, 1  ;;  %v1023_v44 = vadd.f32 %v1022_v22, %v1021_v7  ;;  %v1131_v24 = vadd.f32 %v1130_v34, %v1129_v8  ;;  %v704_v23 = vadd.f32 %v2944_v41, %v703_v43 }
 0x173   : > { %v1031_v45 = vadd.f32 %v1030_v14, %v1029_v11  ;;  %v1041_v46 = vadd.f32 %v1040_v30, %v1039_v13  ;;  %v2948_v52 = vadd.f32 %v1148_v35, %v1147_v54  ;;  %v788_v10 = vmax.f32 %v614_v21, 0.0 }
 0x174   : > { %v1139_v26 = vadd.f32 %v1138_v42, %v1137_v20  ;;  %v1024_v19 = vrot.slane %v1023_v44, 1  ;;  %v1132_v53 = vrot.slane %v1131_v24, 1  ;;  %v806_v55 = vmax.f32 %v704_v23, 0.0 }
 0x175   : > { %v2950_v51 = vmul.f32 0.125, %v1031_v45  ;;  %v1042_v59 = vrot.slane %v1041_v46, 1  ;;  %v1150_v61 = vrot.slane %v2948_v52, 1  ;;  %v1032_v31 = vrot.slane %v788_v10, 4 }
 0x176   : > { %v2953_v57 = vmul.f32 0.125, %v1139_v26  ;;  %v1025_v43 = vadd.f32 %v1024_v19, %v1023_v44  ;;  %v1133_v3 = vadd.f32 %v1132_v53, %v1131_v24  ;;  %v1140_v56 = vrot.slane %v806_v55, 4 }
 0x177   : > { %v1043_v4 = vadd.f32 %v1042_v59, %v1041_v46  ;;  %v1033_v9 = vadd.f32 %v1032_v31, %v788_v10  ;;  %v629_v47 = vadd.f32 %v2944_v41, %v2156_v25  ;;  %v719_v27 = vadd.f32 %v2944_v41, %v2183_v0  ;;  %v2189_v25 = vpop.f32.mrf.mxu1 }
 0x178   : > { %v1234_v50 = vmul.f32 0.125, %v1025_v43  ;;  %v2957_v58 = vmul.f32 0.125, %v1133_v3  ;;  %v1141_v6 = vadd.f32 %v1140_v56, %v806_v55  ;;  %v624_v7 = vadd.f32 %v2944_v41, %v623_v62 }
 0x179   : > { %v2960_v8 = vmul.f32 0.125, %v1043_v4  ;;  %v1034_v11 = vrot.slane %v1033_v9, 2  ;;  %v791_v13 = vmax.f32 %v629_v47, 0.0  ;;  %v809_v54 = vmax.f32 %v719_v27, 0.0  ;;  %v733_v43 = vpop.f32.mrf.mxu1 }
 0x17a   : > { %v2963_v20 = vsel %vm1374_vm1, %v1234_v50, %v1407_v17  ;;  %v1142_v22 = vrot.slane %v1141_v6, 2  ;;  %v790_v34 = vmax.f32 %v624_v7, 0.0  ;;  %v714_v14 = vadd.f32 %v2944_v41, %v713_v48 }
 0x17b   : > { %v1035_v0 = vadd.f32 %v1034_v11, %v1033_v9  ;;  %v1050_v30 = vrot.slane %v791_v13, 4  ;;  %v1158_v35 = vrot.slane %v809_v54, 4  ;;  %v729_v21 = vadd.f32 %v2944_v41, %v2186_v2 }
 0x17c   : > { %v1143_v42 = vadd.f32 %v1142_v22, %v1141_v6  ;;  %v1044_v44 = vrot.slane %v790_v34, 4  ;;  %v808_v24 = vmax.f32 %v714_v14, 0.0  ;;  %v724_v23 = vadd.f32 %v2944_v41, %v723_v37  ;;  %v2192_v14 = vpop.f32.mrf.mxu1 }
 0x17d   : > { %v1036_v45 = vrot.slane %v1035_v0, 1  ;;  %v1051_v46 = vadd.f32 %v1050_v30, %v791_v13  ;;  %v1159_v10 = vadd.f32 %v1158_v35, %v809_v54  ;;  %v811_v17 = vmax.f32 %v729_v21, 0.0 }
 0x17e   : > { %v1144_v26 = vrot.slane %v1143_v42, 1  ;;  %v1045_v19 = vadd.f32 %v1044_v44, %v790_v34  ;;  %v1152_v53 = vrot.slane %v808_v24, 4  ;;  %v810_v55 = vmax.f32 %v724_v23, 0.0 }
 0x17f   : > { %v1037_v48 = vadd.f32 %v1036_v45, %v1035_v0  ;;  %v1052_v59 = vrot.slane %v1051_v46, 2  ;;  %v1160_v31 = vrot.slane %v1159_v10, 2  ;;  %v1170_v62 = vrot.slane %v811_v17, 4 }
 0x180   : > { %v1145_v2 = vadd.f32 %v1144_v26, %v1143_v42  ;;  %v1046_v3 = vrot.slane %v1045_v19, 2  ;;  %v1153_v56 = vadd.f32 %v1152_v53, %v808_v24  ;;  %v1164_v4 = vrot.slane %v810_v55, 4 }
 0x181   : > { %v1236_v9 = vmul.f32 0.125, %v1037_v48  ;;  %v1053_v47 = vadd.f32 %v1052_v59, %v1051_v46  ;;  %v1161_v27 = vadd.f32 %v1160_v31, %v1159_v10  ;;  %v1171_v37 = vadd.f32 %v1170_v62, %v811_v17 }
 0x182   : > { %v2968_v50 = vmul.f32 0.125, %v1145_v2  ;;  %v1047_v6 = vadd.f32 %v1046_v3, %v1045_v19  ;;  %v1154_v7 = vrot.slane %v1153_v56, 2  ;;  %v1165_v11 = vadd.f32 %v1164_v4, %v810_v55 }
 0x183   : > { %v1054_v13 = vrot.slane %v1053_v47, 1  ;;  %v1162_v54 = vrot.slane %v1161_v27, 1  ;;  %v1172_v22 = vrot.slane %v1171_v37, 2  ;;  %v1007_v34 = vadd.f32 %v1006_v32, %v2903_v63 }
 0x184   : > { %v1048_v0 = vrot.slane %v1047_v6, 1  ;;  %v1155_v30 = vadd.f32 %v1154_v7, %v1153_v56  ;;  %v1166_v35 = vrot.slane %v1165_v11, 2  ;;  %v1402_v21 = vsel %vm1376_vm2, %v2883_v12, %v2893_v39  ;;  %v743_v12 = vpop.f32.mrf.mxu1 }
 0x185   : > { %v1163_v42 = vadd.f32 %v1162_v54, %v1161_v27  ;;  %v1173_v44 = vadd.f32 %v1172_v22, %v1171_v37  ;;  %v1231_v24 = vmul.f32 0.125, %v1007_v34  ;;  %v1403_v23 = vsel %vm1378_vm3, %v2905_v18, %v1402_v21 }
 0x186   : > { %v1049_v45 = vadd.f32 %v1048_v0, %v1047_v6  ;;  %v1156_v46 = vrot.slane %v1155_v30, 1  ;;  %v1167_v10 = vadd.f32 %v1166_v35, %v1165_v11  ;;  %v1404_v63 = vsel %vm1380_vm4, %v2900_v60, %v1403_v23 }
 0x187   : > { %v1257_v32 = vmul.f32 0.125, %v1163_v42  ;;  %v1174_v17 = vrot.slane %v1173_v44, 1  ;;  %v1405_v26 = vsel %vm1382_vm5, %v2915_v5, %v1404_v63  ;;  %v739_v19 = vadd.f32 %v2944_v41, %v2189_v25 }
 0x188   : > { %v1238_v39 = vmul.f32 0.125, %v1049_v45  ;;  %v1157_v53 = vadd.f32 %v1156_v46, %v1155_v30  ;;  %v1168_v55 = vrot.slane %v1167_v10, 1  ;;  %v1406_v48 = vsel %vm1384_vm6, %v1231_v24, %v1405_v26 }
 0x189   : > { %v1175_v18 = vadd.f32 %v1174_v17, %v1173_v44  ;;  %1526 = vmatmul.mubr.f32.gmra.mxu1 %v1406_v48  ;;  %v813_v59 = vmax.f32 %v739_v19, 0.0  ;;  %v734_v31 = vadd.f32 %v2944_v41, %v733_v43  ;;  %v749_v60 = vadd.f32 %v2944_v41, %v2192_v14 }
 0x18a   : > { %v1256_v62 = vmul.f32 0.125, %v1157_v53  ;;  %v1169_v2 = vadd.f32 %v1168_v55, %v1167_v10  ;;  %v744_v3 = vadd.f32 %v2944_v41, %v743_v12  ;;  %1531 = vmatprep.mubr.f32.mxu1 %v2445_v49  ;;  %v1055_v5 = vadd.f32 %v1054_v13, %v1053_v47 }
 0x18b   : > { %v1259_v25 = vmul.f32 0.125, %v1175_v18  ;;  %v1182_v56 = vrot.slane %v813_v59, 4  ;;  %v812_v4 = vmax.f32 %v734_v31, 0.0  ;;  %v815_v27 = vmax.f32 %v749_v60, 0.0 }
 0x18c   : > { %v1428_v37 = vsel %vm1372_vm0, %v1257_v32, %v1256_v62  ;;  %v1258_v6 = vmul.f32 0.125, %v1169_v2  ;;  %v814_v7 = vmax.f32 %v744_v3, 0.0  ;;  %v1239_v11 = vmul.f32 0.125, %v1055_v5 }
 0x18d   : > { %v1183_v54 = vadd.f32 %v1182_v56, %v813_v59  ;;  %v1176_v43 = vrot.slane %v812_v4, 4  ;;  %v1194_v22 = vrot.slane %v815_v27, 4  ;;  %v1409_v34 = vsel %vm1376_vm2, %v2950_v51, %v2963_v20 }
 0x18e   : > { %v1429_v41 = vsel %vm1374_vm1, %v1258_v6, %v1428_v37  ;;  %v1188_v14 = vrot.slane %v814_v7, 4  ;;  %v1410_v47 = vsel %vm1378_vm3, %v1236_v9, %v1409_v34  ;;  %v1103_v13 = vadd.f32 %v1102_v40, %v2887_v29 }
 0x18f   : > { %v1184_v0 = vrot.slane %v1183_v54, 2  ;;  %v1177_v30 = vadd.f32 %v1176_v43, %v812_v4  ;;  %v1195_v35 = vadd.f32 %v1194_v22, %v815_v27  ;;  %v1411_v21 = vsel %vm1380_vm4, %v2960_v8, %v1410_v47 }
 0x190   : > { %v1189_v42 = vadd.f32 %v1188_v14, %v814_v7  ;;  %v1412_v44 = vsel %vm1382_vm5, %v1238_v39, %v1411_v21  ;;  %v1247_v24 = vmul.f32 0.125, %v1103_v13  ;;  %v1416_v51 = vsel %vm1376_vm2, %v2872_v16, %v2879_v1 }
 0x191   : > { %v1185_v20 = vadd.f32 %v1184_v0, %v1183_v54  ;;  %v1178_v9 = vrot.slane %v1177_v30, 2  ;;  %v1196_v23 = vrot.slane %v1195_v35, 2  ;;  %v1413_v45 = vsel %vm1384_vm6, %v1239_v11, %v1412_v44 }
 0x192   : > { %v1190_v29 = vrot.slane %v1189_v42, 2  ;;  %1532 = vmatmul.mubr.f32.gmra.mxu1 %v1413_v45  ;;  %v1417_v40 = vsel %vm1378_vm3, %v2890_v33, %v1416_v51  ;;  %v1151_v8 = vadd.f32 %v1150_v61, %v2948_v52  ;;  %v1423_v46 = vsel %vm1376_vm2, %v2929_v36, %v2939_v15 }
 0x193   : > { %v1186_v10 = vrot.slane %v1185_v20, 1  ;;  %v1179_v16 = vadd.f32 %v1178_v9, %v1177_v30  ;;  %v1197_v1 = vadd.f32 %v1196_v23, %v1195_v35  ;;  %1537 = vmatprep.mubr.f32.mxu1 %v2445_v49  ;;  %v1418_v63 = vsel %vm1380_vm4, %v2885_v28, %v1417_v40 }
 0x194   : > { %v1191_v32 = vadd.f32 %v1190_v29, %v1189_v42  ;;  %v1419_v33 = vsel %vm1382_vm5, %v2908_v38, %v1418_v63  ;;  %v1255_v17 = vmul.f32 0.125, %v1151_v8  ;;  %v1424_v52 = vsel %vm1378_vm3, %v2957_v58, %v1423_v46  ;;  %v3059_v42 = vld [vmem:[%s3186_s5] ss:$0 sm:$0xff] }
 0x195   : > { %v1187_v61 = vadd.f32 %v1186_v10, %v1185_v20  ;;  %v1180_v26 = vrot.slane %v1179_v16, 1  ;;  %v1198_v19 = vrot.slane %v1197_v1, 1  ;;  %v1420_v36 = vsel %vm1384_vm6, %v1247_v24, %v1419_v33 }
 0x196   : > { %v1192_v15 = vrot.slane %v1191_v32, 1  ;;  %1538 = vmatmul.mubr.f32.gmra.mxu1 %v1420_v36  ;;  %v1425_v12 = vsel %vm1380_vm4, %v2953_v57, %v1424_v52  ;;  %v1430_v48 = vsel %vm1376_vm2, %v1259_v25, %v1429_v41  ;;  %v1298_v2 = vlaneseq  ;;  %v1296_v25 = vld [vmem:[%s3185_s4] sm:$0x3] }
 0x197   : > { %v1181_v39 = vadd.f32 %v1180_v26, %v1179_v16  ;;  %1543 = vmatprep.mubr.f32.mxu1 %v2445_v49  ;;  %v1426_v28 = vsel %vm1382_vm5, %v2968_v50, %v1425_v12  ;;  %v1199_v38 = vadd.f32 %v1198_v19, %v1197_v1  ;;  %v1261_v53 = vmul.f32 0.125, %v1187_v61 }
 0x198   : > { %v1193_v55 = vadd.f32 %v1192_v15, %v1191_v32  ;;  %v1427_v58 = vsel %vm1384_vm6, %v1255_v17, %v1426_v28  ;;  %v1299_v3 = vshrl.u32 %v1298_v2, 7  ;;  %v3035_v4 = vand.u32 127, %v1298_v2 }
 0x199   : > { %v1260_v18 = vmul.f32 0.125, %v1181_v39  ;;  %v1263_v31 = vmul.f32 0.125, %v1199_v38 }
 0x19a   : > { %v1262_v59 = vmul.f32 0.125, %v1193_v55  ;;  %1544 = vmatmul.mubr.f32.gmra.mxu1 %v1427_v58  ;;  %v1300_v5 = vsub.s32 0, %v1299_v3  ;;  %v1304_v56 = vsub.s32 1, %v1299_v3  ;;  %vm1716_vm7 = vcmp.lt.s32.totalorder %v3035_v4, 3 }
 0x19b   : > { %1549 = vmatprep.mubr.f32.mxu1 %v2445_v49  ;;  %v1431_v57 = vsel %vm1378_vm3, %v1260_v18, %v1430_v48 }
 0x19c   : > { %v1432_v60 = vsel %vm1380_vm4, %v1261_v53, %v1431_v57  ;;  %v3037_v49 = vrot.slane %v1296_v25, %v1300_v5  ;;  %v3039_v27 = vrot.slane %v1296_v25, %v1304_v56 }
 0x19d   : > { %v1433_v62 = vsel %vm1382_vm5, %v1262_v59, %v1432_v60 }
 0x19e   : > { %v1434_v50 = vsel %vm1384_vm6, %v1263_v31, %v1433_v62 }
 0x19f   : > { %1550 = vmatmul.mubr.f32.gmra.mxu1 %v1434_v50 }
 0x1e6   : > { %v1509_v37 = vpop.f32.mrf.mxu1 }
 0x1e7   : > { %v1510_v6 = vadd.f32 %v1509_v37, %v3037_v49 }
 0x1e8   : > { %v1511_v7 = vpop.f32.mrf.mxu1 }
 0x1e9   : > { %v1512_v11 = vadd.f32 %v1511_v7, %v3039_v27  ;;  %v3046_v54 = vsel %vm1716_vm7, %v1510_v6, -inf }
 0x1ea   : > { %1725 = vmax.xlane.f32.xlu0 %v3046_v54 }
 0x1eb   : > { %v1964_v43 = vmul.f32 -1.442695, %v1512_v11 }
 0x1ed   : > { %2268 = vpow2.f32 %v1964_v43 }
 0x1ee   : > { %2270 = vtanh.f32 %v1510_v6 }
 0x1fa   : > { %v2269_v22 = vpop.eup %2268 }
 0x1fb   : > { %v1588_v34 = vadd.f32 1.0, %v2269_v22  ;;  %v2271_v35 = vpop.eup %2270 }
 0x1fd   : > { %2272 = vrcp.f32 %v1588_v34 }
 0x200   : > { %v1515_v41 = vpop.f32.mrf.mxu1 }
 0x201   : > { %v1516_v14 = vadd.f32 %v1515_v41, %v3037_v49 }
 0x202   : > { %v1517_v47 = vpop.f32.mrf.mxu1 }
 0x203   : > { %v1518_v13 = vadd.f32 %v1517_v47, %v3039_v27  ;;  %v3053_v0 = vsel %vm1716_vm7, %v1516_v14, -inf }
 0x204   : > { %1727 = vmax.xlane.f32.xlu1 %v3053_v0 }
 0x205   : > { %v1965_v30 = vmul.f32 -1.442695, %v1518_v13 }
 0x207   : > { %2274 = vpow2.f32 %v1965_v30 }
 0x208   : > { %2276 = vtanh.f32 %v1516_v14 }
 0x20a   : > { %v2273_v21 = vpop.eup %2272 }
 0x20b   : > { %v1612_v44 = vmul.f32 %v2273_v21, %v2271_v35 }
 0x20d   : > { %v1627_v24 = vmul.f32 %v3059_v42, %v1612_v44 }
 0x20f   : > { %1635 = vadd.xlane.f32.xlu0 %v1627_v24 }
 0x214   : > { %v2275_v51 = vpop.eup %2274 }
 0x215   : > { %v1589_v20 = vadd.f32 1.0, %v2275_v51  ;;  %v2277_v9 = vpop.eup %2276 }
 0x217   : > { %2278 = vrcp.f32 %v1589_v20 }
 0x224   : > { %v2279_v23 = vpop.eup %2278 }
 0x225   : > { %v1613_v45 = vmul.f32 %v2279_v23, %v2277_v9 }
 0x227   : > { %v1628_v29 = vmul.f32 %v3059_v42, %v1613_v45 }
 0x228   : > { %v1521_v40 = vpop.f32.mrf.mxu1 }
 0x229   : > { %v1522_v8 = vadd.f32 %v1521_v40, %v3037_v49  ;;  %1637 = vadd.xlane.f32.xlu0 %v1628_v29 }
 0x22a   : > { %v1523_v46 = vpop.f32.mrf.mxu1 }
 0x22b   : > { %v1524_v10 = vadd.f32 %v1523_v46, %v3039_v27  ;;  %v3067_v16 = vsel %vm1716_vm7, %v1522_v8, -inf }
 0x22c   : > { %1729 = vmax.xlane.f32.xlu1 %v3067_v16 }
 0x22d   : > { %v1966_v1 = vmul.f32 -1.442695, %v1524_v10 }
 0x22f   : > { %2280 = vpow2.f32 %v1966_v1 }
 0x230   : > { %2282 = vtanh.f32 %v1522_v8 }
 0x23c   : > { %v2281_v63 = vpop.eup %2280 }
 0x23d   : > { %v1590_v32 = vadd.f32 1.0, %v2281_v63  ;;  %v2283_v52 = vpop.eup %2282 }
 0x23f   : > { %2284 = vrcp.f32 %v1590_v32 }
 0x249   : > { %v1527_v33 = vpop.f32.mrf.mxu1 }
 0x24a   : > { %v1528_v17 = vadd.f32 %v1527_v33, %v3037_v49 }
 0x24b   : > { %v1529_v61 = vpop.f32.mrf.mxu1 }
 0x24c   : > { %v2285_v26 = vpop.eup %2284  ;;  %v1530_v19 = vadd.f32 %v1529_v61, %v3039_v27  ;;  %v3074_v36 = vsel %vm1716_vm7, %v1528_v17, -inf }
 0x24d   : > { %1731 = vmax.xlane.f32.xlu1 %v3074_v36  ;;  %v1614_v15 = vmul.f32 %v2285_v26, %v2283_v52 }
 0x24e   : > { %v1967_v12 = vmul.f32 -1.442695, %v1530_v19 }
 0x24f   : > { %v1629_v39 = vmul.f32 %v3059_v42, %v1614_v15 }
 0x250   : > { %2286 = vpow2.f32 %v1967_v12 }
 0x251   : > { %1639 = vadd.xlane.f32.xlu1 %v1629_v39 }
 0x252   : > { %v1533_v28 = vpop.f32.mrf.mxu1 }
 0x253   : > { %v1534_v56 = vadd.f32 %v1533_v28, %v3037_v49 }
 0x254   : > { %v1535_v38 = vpop.f32.mrf.mxu1 }
 0x255   : > { %v1536_v53 = vadd.f32 %v1535_v38, %v3039_v27  ;;  %v1721_v19 = vsel %vm1716_vm7, %v1534_v56, -inf }
 0x256   : > { %v1539_v55 = vpop.f32.mrf.mxu1 }
 0x257   : > { %v1968_v58 = vmul.f32 -1.442695, %v1536_v53  ;;  %v1540_v11 = vadd.f32 %v1539_v55, %v3037_v49  ;;  %v2446_v53 = vmov 0  }
 0x258   : > { %v1541_v48 = vpop.f32.mrf.mxu1  ;;  %2267 = vset.pattern.permute.xlu1 %v2446_v53  ;;  %2266 = vset.pattern.permute.xlu0 %v2446_v53 }
 0x259   : > { %2288 = vpow2.f32 %v1968_v58  ;;  %v1542_v18 = vadd.f32 %v1541_v48, %v3039_v27 }
 0x25a   : > { %v1545_v59 = vpop.f32.mrf.mxu1 }
 0x25b   : > { %v1969_v31 = vmul.f32 -1.442695, %v1542_v18  ;;  %v1546_v34 = vadd.f32 %v1545_v59, %v3037_v49 }
 0x25c   : > { %v1547_v57 = vpop.f32.mrf.mxu1 }
 0x25d   : > { %v2287_v60 = vpop.eup %2286  ;;  %2290 = vpow2.f32 %v1969_v31  ;;  %v1548_v62 = vadd.f32 %v1547_v57, %v3039_v27  ;;  %v1723_v39 = vsel %vm1716_vm7, %v1546_v34, -inf }
 0x25e   : > { %v1591_v50 = vadd.f32 1.0, %v2287_v60  ;;  %2292 = vtanh.f32 %v1528_v17  ;;  %v1722_v17 = vsel %vm1716_vm7, %v1540_v11, -inf }
 0x25f   : > { %v1970_v2 = vmul.f32 -1.442695, %v1548_v62  ;;  %v1551_v3 = vpop.f32.mrf.mxu1 }
 0x260   : > { %2294 = vrcp.f32 %v1591_v50  ;;  %v1552_v30 = vadd.f32 %v1551_v3, %v3037_v49 }
 0x261   : > { %2296 = vpow2.f32 %v1970_v2  ;;  %v1553_v5 = vpop.f32.mrf.mxu1 }
 0x262   : > { %v1554_v25 = vadd.f32 %v1553_v5, %v3039_v27 }
 0x264   : > { %v1971_v37 = vmul.f32 -1.442695, %v1554_v25 }
 0x266   : > { %v2289_v6 = vpop.eup %2288  ;;  %2298 = vpow2.f32 %v1971_v37 }
 0x267   : > { %v1592_v7 = vadd.f32 1.0, %v2289_v6  ;;  %2300 = vtanh.f32 %v1534_v56 }
 0x269   : > { %2302 = vrcp.f32 %v1592_v7 }
 0x26a   : > { %v2291_v43 = vpop.eup %2290  ;;  %2304 = vtanh.f32 %v1540_v11 }
 0x26b   : > { %v1593_v22 = vadd.f32 1.0, %v2291_v43  ;;  %v2293_v41 = vpop.eup %2292 }
 0x26d   : > { %v2295_v14 = vpop.eup %2294  ;;  %2306 = vrcp.f32 %v1593_v22 }
 0x26e   : > { %v2297_v47 = vpop.eup %2296  ;;  %v1615_v27 = vmul.f32 %v2295_v14, %v2293_v41  ;;  %2308 = vtanh.f32 %v1546_v34 }
 0x26f   : > { %v1594_v13 = vadd.f32 1.0, %v2297_v47 }
 0x270   : > { %v1630_v35 = vmul.f32 %v3059_v42, %v1615_v27 }
 0x271   : > { %2310 = vrcp.f32 %v1594_v13 }
 0x272   : > { %1641 = vadd.xlane.f32.xlu1 %v1630_v35  ;;  %2312 = vtanh.f32 %v1552_v30 }
 0x273   : > { %v2299_v21 = vpop.eup %2298  ;;  %v1726_v45 = vpop.xlane.xlu0 %1725 }
 0x274   : > { %v1595_v44 = vadd.f32 1.0, %v2299_v21  ;;  %v2301_v24 = vpop.eup %2300  ;;  %v1741_v49 = vsub.f32 %v3046_v54, %v1726_v45  ;;  %v3095_v54 = vsel %vm1716_vm7, %v1552_v30, -inf }
 0x276   : > { %v2303_v51 = vpop.eup %2302  ;;  %2314 = vrcp.f32 %v1595_v44  ;;  %v1749_v63 = vmul.f32 1.442695, %v1741_v49 }
 0x277   : > { %v1616_v20 = vmul.f32 %v2303_v51, %v2301_v24  ;;  %v2305_v9 = vpop.eup %2304 }
 0x278   : > { %2316 = vpow2.f32 %v1749_v63 }
 0x279   : > { %v1631_v23 = vmul.f32 %v3059_v42, %v1616_v20 }
 0x27a   : > { %v2307_v29 = vpop.eup %2306 }
 0x27b   : > { %1643 = vadd.xlane.f32.xlu0 %v1631_v23  ;;  %v1617_v40 = vmul.f32 %v2307_v29, %v2305_v9  ;;  %v2309_v8 = vpop.eup %2308 }
 0x27d   : > { %v1632_v46 = vmul.f32 %v3059_v42, %v1617_v40 }
 0x27e   : > { %v2311_v10 = vpop.eup %2310 }
 0x27f   : > { %1645 = vadd.xlane.f32.xlu1 %v1632_v46  ;;  %v1618_v1 = vmul.f32 %v2311_v10, %v2309_v8  ;;  %v2313_v32 = vpop.eup %2312 }
 0x281   : > { %v1633_v33 = vmul.f32 %v3059_v42, %v1618_v1 }
 0x283   : > { %v2315_v52 = vpop.eup %2314  ;;  %1735 = vmax.xlane.f32.xlu1 %v1722_v17  ;;  %1647 = vadd.xlane.f32.xlu0 %v1633_v33 }
 0x284   : > { %v1619_v61 = vmul.f32 %v2315_v52, %v2313_v32 }
 0x285   : > { %v3104_v38 = vpop.eup %2316 }
 0x286   : > { %v1634_v26 = vmul.f32 %v3059_v42, %v1619_v61 }
 0x287   : > { %1739 = vmax.xlane.f32.xlu1 %v3095_v54 }
 0x288   : > { %1649 = vadd.xlane.f32.xlu0 %v1634_v26 }
 0x28c   : > { %1733 = vmax.xlane.f32.xlu0 %v1721_v19 }
 0x28d   : > { %v1728_v15 = vpop.xlane.xlu1 %1727 }
 0x28e   : > { %v1742_v12 = vsub.f32 %v3053_v0, %v1728_v15 }
 0x290   : > { %1737 = vmax.xlane.f32.xlu0 %v1723_v39  ;;  %v1751_v28 = vmul.f32 1.442695, %v1742_v12 }
 0x292   : > { %2318 = vpow2.f32 %v1751_v28 }
 0x294   : > { %1765 = vadd.xlane.f32.xlu0 %v3104_v38 }
 0x298   : > { %v1636_v57 = vpop.xlane.xlu0 %1635 }
 0x29f   : > { %v3107_v42 = vpop.eup %2318 }
 0x2a0   : > { %1767 = vadd.xlane.f32.xlu1 %v3107_v42 }
 0x2b2   : > { %v1638_v62 = vpop.xlane.xlu0 %1637 }
 0x2b5   : > { %v1730_v55 = vpop.xlane.xlu1 %1729 }
 0x2b6   : > { %v1743_v0 = vsub.f32 %v3067_v16, %v1730_v55  ;;  %v1973_v16 = vld [vmem:[#allocation2] ss:$0 sm:$0xff] }
 0x2b7   : > { %v1659_v2 = vadd.f32 %v1973_v16, %v1638_v62  ;;  %v1658_v22 = vadd.f32 %v1973_v16, %v1636_v57 }
 0x2b8   : > { %v1753_v58 = vmul.f32 1.442695, %v1743_v0 }
 0x2b9   : > { %v1975_v25 = vmul.f32 -1.442695, %v1659_v2  ;;  %v1974_v27 = vmul.f32 -1.442695, %v1658_v22 }
 0x2ba   : > { %2320 = vpow2.f32 %v1753_v58 }
 0x2c7   : > { %v3111_v4 = vpop.eup %2320 }
 0x2c8   : > { %1769 = vadd.xlane.f32.xlu0 %v3111_v4 }
 0x2d6   : > { %v1732_v48 = vpop.xlane.xlu1 %1731 }
 0x2d7   : > { %v1744_v18 = vsub.f32 %v3074_v36, %v1732_v48 }
 0x2d9   : > { %v1755_v59 = vmul.f32 1.442695, %v1744_v18 }
 0x2da   : > { %v1640_v60 = vpop.xlane.xlu1 %1639 }
 0x2db   : > { %2322 = vpow2.f32 %v1755_v59  ;;  %v1660_v21 = vadd.f32 %v1973_v16, %v1640_v60 }
 0x2dc   : > { %2324 = vpow2.f32 %v1975_v25 }
 0x2dd   : > { %v1976_v51 = vmul.f32 -1.442695, %v1660_v21 }
 0x2e8   : > { %v3115_v31 = vpop.eup %2322 }
 0x2e9   : > { %1771 = vadd.xlane.f32.xlu1 %v3115_v31  ;;  %v2325_v47 = vpop.eup %2324 }
 0x2ea   : > { %v1691_v35 = vadd.f32 1.0, %v2325_v47 }
 0x2fb   : > { %v1642_v50 = vpop.xlane.xlu1 %1641 }
 0x2fc   : > { %v1661_v24 = vadd.f32 %v1973_v16, %v1642_v50 }
 0x2fe   : > { %v1977_v45 = vmul.f32 -1.442695, %v1661_v24 }
 0x304   : > { %v1644_v3 = vpop.xlane.xlu0 %1643 }
 0x305   : > { %v1662_v20 = vadd.f32 %v1973_v16, %v1644_v3 }
 0x307   : > { %v1978_v40 = vmul.f32 -1.442695, %v1662_v20 }
 0x308   : > { %v1646_v5 = vpop.xlane.xlu1 %1645 }
 0x309   : > { %v1663_v29 = vadd.f32 %v1973_v16, %v1646_v5 }
 0x30b   : > { %v1979_v10 = vmul.f32 -1.442695, %v1663_v29 }
 0x30c   : > { %v1736_v56 = vpop.xlane.xlu1 %1735  ;;  %v1648_v37 = vpop.xlane.xlu0 %1647 }
 0x30d   : > { %v1746_v6 = vsub.f32 %v1722_v17, %v1736_v56  ;;  %v1664_v8 = vadd.f32 %v1973_v16, %v1648_v37 }
 0x30f   : > { %v1759_v36 = vmul.f32 1.442695, %v1746_v6  ;;  %v1980_v63 = vmul.f32 -1.442695, %v1664_v8 }
 0x310   : > { %v1740_v33 = vpop.xlane.xlu1 %1739 }
 0x311   : > { %2326 = vpow2.f32 %v1759_v36  ;;  %v1650_v7 = vpop.xlane.xlu0 %1649  ;;  %v1748_v61 = vsub.f32 %v3095_v54, %v1740_v33 }
 0x312   : > { %v1665_v1 = vadd.f32 %v1973_v16, %v1650_v7 }
 0x313   : > { %v1763_v28 = vmul.f32 1.442695, %v1748_v61 }
 0x314   : > { %v1981_v32 = vmul.f32 -1.442695, %v1665_v1 }
 0x315   : > { %v1734_v11 = vpop.xlane.xlu0 %1733 }
 0x316   : > { %v1745_v43 = vsub.f32 %v1721_v19, %v1734_v11 }
 0x318   : > { %v1757_v34 = vmul.f32 1.442695, %v1745_v43 }
 0x319   : > { %v1738_v41 = vpop.xlane.xlu0 %1737 }
 0x31a   : > { %2328 = vpow2.f32 %v1757_v34  ;;  %v1747_v14 = vsub.f32 %v1723_v39, %v1738_v41 }
 0x31c   : > { %v1761_v13 = vmul.f32 1.442695, %v1747_v14 }
 0x31e   : > { %v3118_v30 = vpop.eup %2326  ;;  %2330 = vpow2.f32 %v1761_v13 }
 0x31f   : > { %2332 = vpow2.f32 %v1974_v27  ;;  %1775 = vadd.xlane.f32.xlu1 %v3118_v30 }
 0x320   : > { %2334 = vrcp.f32 %v1691_v35 }
 0x321   : > { %2336 = vpow2.f32 %v1976_v51 }
 0x322   : > { %2338 = vpow2.f32 %v1977_v45 }
 0x323   : > { %2340 = vpow2.f32 %v1978_v40 }
 0x327   : > { %v3121_v44 = vpop.eup %2328 }
 0x328   : > { %1773 = vadd.xlane.f32.xlu0 %v3121_v44 }
 0x329   : > { %v1768_v20 = vpop.xlane.xlu1 %1767 }
 0x32b   : > { %v3124_v9 = vpop.eup %2330 }
 0x32c   : > { %v2333_v23 = vpop.eup %2332  ;;  %1777 = vadd.xlane.f32.xlu0 %v3124_v9 }
 0x32d   : > { %v2335_v49 = vpop.eup %2334  ;;  %v1690_v46 = vadd.f32 1.0, %v2333_v23  ;;  %v1766_v23 = vpop.xlane.xlu0 %1765 }
 0x32e   : > { %v2337_v17 = vpop.eup %2336  ;;  %v1860_v59 = vsel %vm1858_vm8, %v2335_v49, 0.0 }
 0x32f   : > { %2342 = vrcp.f32 %v1690_v46  ;;  %v2339_v52 = vpop.eup %2338  ;;  %v1692_v26 = vadd.f32 1.0, %v2337_v17 }
 0x330   : > { %1804 = vperm.xlu1 %2267, %v2335_v49   ;;  %2344 = vpow2.f32 %v1979_v10  ;;  %v2341_v19 = vpop.eup %2340  ;;  %v1693_v12 = vadd.f32 1.0, %v2339_v52 }
 0x331   : > { %2346 = vpow2.f32 %v1980_v63  ;;  %v1694_v53 = vadd.f32 1.0, %v2341_v19 }
 0x332   : > { %2348 = vpow2.f32 %v1981_v32 }
 0x333   : > { %2350 = vrcp.f32 %v1692_v26 }
 0x334   : > { %2352 = vrcp.f32 %v1693_v12 }
 0x335   : > { %2354 = vpow2.f32 %v1763_v28 }
 0x336   : > { %2356 = vrcp.f32 %v1694_v53 }
 0x33c   : > { %v2343_v15 = vpop.eup %2342 }
 0x33d   : > { %v2345_v39 = vpop.eup %2344  ;;  %v1859_v62 = vsel %vm1858_vm8, %v2343_v15, 0.0 }
 0x33e   : > { %v2347_v55 = vpop.eup %2346  ;;  %v1695_v0 = vadd.f32 1.0, %v2345_v39  ;;  %v1861_v2 = vadd.f32 %v1860_v59, %v1859_v62 }
 0x33f   : > { %v2349_v58 = vpop.eup %2348  ;;  %v1696_v48 = vadd.f32 1.0, %v2347_v55 }
 0x340   : > { %2358 = vrcp.f32 %v1695_v0  ;;  %v1697_v18 = vadd.f32 1.0, %v2349_v58  ;;  %v2351_v54 = vpop.eup %2350 }
 0x341   : > { %2360 = vrcp.f32 %v1696_v48  ;;  %v2353_v57 = vpop.eup %2352  ;;  %v1862_v50 = vsel %vm1858_vm8, %v2351_v54, 0.0 }
 0x342   : > { %1799 = vperm.xlu0 %2266, %v2343_v15   ;;  %2362 = vrcp.f32 %v1697_v18  ;;  %v3129_v60 = vpop.eup %2354  ;;  %v1864_v3 = vsel %vm1858_vm8, %v2353_v57, 0.0  ;;  %v1863_v25 = vadd.f32 %v1862_v50, %v1861_v2 }
 0x343   : > { %v2357_v16 = vpop.eup %2356  ;;  %2364 = vrcp.f32 %v1766_v23 }
 0x344   : > { %v1866_v56 = vsel %vm1858_vm8, %v2357_v16, 0.0  ;;  %v1865_v6 = vadd.f32 %v1864_v3, %v1863_v25  ;;  %2366 = vrcp.f32 %v1768_v20 }
 0x346   : > { %v1867_v11 = vadd.f32 %v1866_v56, %v1865_v6 }
 0x34d   : > { %v2359_v5 = vpop.eup %2358 }
 0x34e   : > { %v2361_v37 = vpop.eup %2360  ;;  %v1868_v36 = vsel %vm1858_vm8, %v2359_v5, 0.0 }
 0x34f   : > { %v2363_v7 = vpop.eup %2362  ;;  %v1870_v43 = vsel %vm1858_vm8, %v2361_v37, 0.0  ;;  %v1869_v22 = vadd.f32 %v1868_v36, %v1867_v11 }
 0x350   : > { %v1872_v34 = vsel %vm1858_vm8, %v2363_v7, 0.0  ;;  %v2365_v63 = vpop.eup %2364 }
 0x351   : > { %v1871_v41 = vadd.f32 %v1870_v43, %v1869_v22  ;;  %v1770_v29 = vpop.xlane.xlu0 %1769  ;;  %v2367_v32 = vpop.eup %2366  ;;  %v1782_v61 = vmul.f32 %v2365_v63, %v3104_v38 }
 0x352   : > { %2368 = vrcp.f32 %v1770_v29  ;;  %v1784_v19 = vmul.f32 %v2367_v32, %v3107_v42 }
 0x353   : > { %v1873_v14 = vadd.f32 %v1872_v34, %v1871_v41 }
 0x354   : > { %1779 = vadd.xlane.f32.xlu1 %v3129_v60 }
 0x355   : > { %v1874_v47 = vrot.slane %v1873_v14, 4 }
 0x357   : > { %v1875_v27 = vadd.f32 %v1874_v47, %v1873_v14 }
 0x359   : > { %v1876_v13 = vrot.slane %v1875_v27, 2 }
 0x35b   : > { %v1877_v35 = vadd.f32 %v1876_v13, %v1875_v27 }
 0x35d   : > { %v1878_v21 = vrot.slane %v1877_v35, 1 }
 0x35f   : > { %v1879_v24 = vadd.f32 %v1878_v21, %v1877_v35  ;;  %v2369_v33 = vpop.eup %2368 }
 0x360   : > { %v1786_v12 = vmul.f32 %v2369_v33, %v3111_v4 }
 0x361   : > { %v1880_v51 = vmax.f32 %v1879_v24, 1.0 }
 0x365   : > { %1809 = vperm.xlu1 %2267, %v2351_v54  }
 0x369   : > { %1814 = vperm.xlu1 %2267, %v2353_v57  }
 0x36d   : > { %1819 = vperm.xlu1 %2267, %v2357_v16  }
 0x371   : > { %1824 = vperm.xlu1 %2267, %v2359_v5  }
 0x372   : > { %v1772_v45 = vpop.xlane.xlu1 %1771 }
 0x373   : > { %2370 = vrcp.f32 %v1772_v45 }
 0x375   : > { %1829 = vperm.xlu1 %2267, %v2361_v37  }
 0x379   : > { %1834 = vperm.xlu1 %2267, %v2363_v7  }
 0x37d   : > { %1883 = vperm.xlu1 %2267, %v1880_v51  }
 0x380   : > { %v2371_v26 = vpop.eup %2370 }
 0x381   : > { %v1788_v0 = vmul.f32 %v2371_v26, %v3115_v31 }
 0x3a8   : > { %v1776_v40 = vpop.xlane.xlu1 %1775 }
 0x3ac   : > { %v1805_v49 = vpop.permute.xlu1 %1804 }
 0x3ad   : > { %v1838_v53 = vmul.f32 %v1805_v49, %v1784_v19 }
 0x3b1   : > { %v1774_v8 = vpop.xlane.xlu0 %1773 }
 0x3b2   : > { %2372 = vrcp.f32 %v1774_v8 }
 0x3b3   : > { %2374 = vrcp.f32 %v1776_v40 }
 0x3b5   : > { %v1778_v46 = vpop.xlane.xlu0 %1777 }
 0x3b6   : > { %2376 = vrcp.f32 %v1778_v46 }
 0x3bd   : > { %v1800_v17 = vpop.permute.xlu0 %1799 }
 0x3be   : > { %v1837_v15 = vmul.f32 %v1800_v17, %v1782_v61 }
 0x3bf   : > { %v2373_v39 = vpop.eup %2372 }
 0x3c0   : > { %v2375_v58 = vpop.eup %2374  ;;  %v1845_v48 = vadd.f32 %v1838_v53, %v1837_v15  ;;  %v1790_v54 = vmul.f32 %v2373_v39, %v3121_v44 }
 0x3c1   : > { %v1792_v42 = vmul.f32 %v2375_v58, %v3118_v30 }
 0x3c3   : > { %v2377_v59 = vpop.eup %2376 }
 0x3c4   : > { %v1794_v4 = vmul.f32 %v2377_v59, %v3124_v9 }
 0x3dd   : > { %v1780_v10 = vpop.xlane.xlu1 %1779 }
 0x3de   : > { %2378 = vrcp.f32 %v1780_v10 }
 0x3e1   : > { %v1810_v1 = vpop.permute.xlu1 %1809 }
 0x3e2   : > { %v1839_v55 = vmul.f32 %v1810_v1, %v1786_v12 }
 0x3e4   : > { %v1846_v38 = vadd.f32 %v1845_v48, %v1839_v55 }
 0x3e5   : > { %v1815_v52 = vpop.permute.xlu1 %1814 }
 0x3e6   : > { %v1840_v18 = vmul.f32 %v1815_v52, %v1788_v0 }
 0x3e8   : > { %v1847_v50 = vadd.f32 %v1846_v38, %v1840_v18 }
 0x3e9   : > { %v1820_v28 = vpop.permute.xlu1 %1819 }
 0x3ea   : > { %v1841_v62 = vmul.f32 %v1820_v28, %v1790_v54 }
 0x3eb   : > { %v2379_v2 = vpop.eup %2378 }
 0x3ec   : > { %v1848_v5 = vadd.f32 %v1847_v50, %v1841_v62  ;;  %v1796_v56 = vmul.f32 %v2379_v2, %v3129_v60 }
 0x3ed   : > { %v1825_v57 = vpop.permute.xlu1 %1824 }
 0x3ee   : > { %v1842_v16 = vmul.f32 %v1825_v57, %v1792_v42 }
 0x3f0   : > { %v1849_v25 = vadd.f32 %v1848_v5, %v1842_v16 }
 0x3f1   : > { %v1830_v3 = vpop.permute.xlu1 %1829 }
 0x3f2   : > { %v1843_v31 = vmul.f32 %v1830_v3, %v1794_v4 }
 0x3f4   : > { %v1850_v37 = vadd.f32 %v1849_v25, %v1843_v31 }
 0x3f5   : > { %v1835_v44 = vpop.permute.xlu1 %1834 }
 0x3f6   : > { %v1844_v6 = vmul.f32 %v1835_v44, %v1796_v56 }
 0x3f8   : > { %v1851_v36 = vadd.f32 %v1850_v37, %v1844_v6 }
 0x3f9   : > { %v1884_v7 = vpop.permute.xlu1 %1883 }
 0x3fa   : > { %v1852_v11 = vrot.slane %v1851_v36, 4  ;;  %2380 = vrcp.f32 %v1884_v7 }
 0x3fc   : > { %v1853_v30 = vadd.f32 %v1852_v11, %v1851_v36 }
 0x3fe   : > { %v1854_v43 = vrot.slane %v1853_v30, 2 }
 0x400   : > { %v1855_v9 = vadd.f32 %v1854_v43, %v1853_v30 }
 0x402   : > { %v1856_v22 = vrot.slane %v1855_v9, 1 }
 0x404   : > { %v1857_v34 = vadd.f32 %v1856_v22, %v1855_v9 }
 0x407   : > { %v2381_v41 = vpop.eup %2380 }
 0x408   : > { %v1887_v14 = vmul.f32 %v2381_v41, %v1857_v34 }
 0x40a   : > { %1888 = vst [vmem:[%s273_s22] sm:$0x1] %v1887_v14 }
 0x40b   : > { %2396 = shalt.err (!%p2393_p3)
}
 0x40c   : > { %s2397_s16 = scalar_lea.hbm %s1900_s30, 16  ;;  %s2401_s19 = scalar_lea.hbm %s3188_s7, 32 }
 0x40d   : > { %p2398_p4 = scmp.ne.s32.totalorder %s1900_s30, %s2397_s16  ;;  %p2402_p9 = scmp.lt.s32.totalorder %s1900_s30, %s3188_s7 }
 0x40e   : > { %p2403_p10 = scmp.lt.s32.totalorder %s2401_s19, %s2397_s16 }
 0x40f   : > { %p2399_p7 = pnand %p2398_p4, %p2529_p5 }
 0x410   : > { %p2404_p11 = por %p2403_p10, %p2402_p9 }
 0x411   : > { %p2400_p8 = pneg %p2399_p7 }
 0x413   : > { %p2405_p12 = pnand %p2404_p11, %p2400_p8 }
 0x415   : > { %2408 = shalt.err (!%p2405_p12)
}
 0x416   : > { %2225 = dma.vmem_to_hbm [thread:$0]  (%p2529_p5), %s1903_s23, 16, %s1900_s30, %s1890_s9  }
 0x417 PF: > { %p2231_p13 = scmp.ge.s32.totalorder %s2443_s29, 2  ;;  %s1914_s22 = sand.u32 1, %s2431_s26  }
 0x418   : > { %s1915_s24 = scalar_lea.sflag [#allocation4], %s1914_s22 }
 0x419   : > { %p2228_p0 = pnand %p2231_p13, %p2533_p6 }
 0x41b   : > { %p2229_p1 = pneg %p2228_p0 }
 0x41d   : > { %2426 = dma.done.wait (%p2229_p1), %s1915_s24, 16  }
 0x41e   : > { %2428 = vsyncadd (%p2229_p1), %s1915_s24, 4294967280  ;;  %p19_p2 = scmp.ge.s32.totalorder %s2516_s8, 4   ;;  %s3191_s26 = smov %s2435_s27 }
 0x41f   : > { %s3192_s27 = smov %s2439_s28  ;;  %s3193_s28 = smov %s2527_s11 }
 0x420   : > { %s3194_s29 = smov %s2516_s8  ;;  %21 = sbr.rel (!%p19_p2) target bundleno = 6 (0x6), region = 83 }
 0x425   :  { %1919 = vsyncpa [#allocation4], 1 }
 0x426   :  { %1921 = vsyncpa [#allocation4 + $0x1], 1 }

</bundles_post_ra>
